<compile_context>
chip_gen: v7x
topology: tpu7x:2x2x1
jax: 0.10.0
libtpu: 0.0.40
codegen_flags: <defaults>
</compile_context>

<pallas_src>
import jax
import jax.numpy as jnp
import numpy as np
from jax.experimental import pallas as pl
from jax.experimental.pallas import tpu as pltpu

# ----------------------------- configuration --------------------------------
N_BATCH = 2       # batch size
C_IN    = 4       # input image channels
H = W   = 16      # spatial size
HW      = H * W
C_HID   = 32      # conv output channels
DIM     = 128     # MoCo feature dimension
K_QUEUE = 512     # queue size (small synthetic stand-in for 65536)
TK      = 256     # queue tile width: multiple of 256 (v6e/v7x MXU), >=2 tiles for megacore
T_TEMP  = 0.07    # softmax temperature
EPS     = 1e-12   # F.normalize eps

assert K_QUEUE % TK == 0
assert K_QUEUE % N_BATCH == 0   # MoCo enqueue assumption (no wrap-around needed)


# ------------------------------ Pallas kernels --------------------------------
def encoder_kernel(patches_ref, pool_ref, wconv_ref, bconv_ref, wfc_ref, bfc_ref,
                   qk_ref, lpos_ref):
    """Fused query+key towers: flat conv-matmul, ReLU, MXU global-avg-pool, fc,
    L2-normalize, and the positive logit (scaled by 1/T)."""
    # 3x3 conv (pad=1) as ONE flat matmul over im2col patches of both towers:
    # (2N*HW, P) @ (P, Ch)  -- fills MXU sublanes far better than a batch-2 einsum.
    h = jnp.dot(patches_ref[...], wconv_ref[...],
                preferred_element_type=jnp.float32)               # (2N*HW, Ch)
    h = jnp.maximum(h + bconv_ref[...], 0.0)                      # bias + ReLU (VPU)

    # Global average pool via the MXU: (2N, 2N*HW) @ (2N*HW, Ch) -> (2N, Ch).
    pooled = jnp.dot(pool_ref[...], h, preferred_element_type=jnp.float32)

    feat = jnp.dot(pooled, wfc_ref[...],
                   preferred_element_type=jnp.float32) + bfc_ref[...]   # (2N, dim)

    # F.normalize(x, dim=1) == x * rsqrt(max(||x||^2, eps^2))  (EUP rsqrt, no VALU divide)
    sumsq = jnp.sum(feat * feat, axis=1, keepdims=True)
    qk = feat * jax.lax.rsqrt(jnp.maximum(sumsq, EPS * EPS))      # (2N, dim)
    qk_ref[...] = qk

    q = qk[:N_BATCH]
    k = qk[N_BATCH:]
    lpos_ref[...] = jnp.sum(q * k, axis=1, keepdims=True) * (1.0 / T_TEMP)


def lneg_kernel(q_ref, queue_ref, out_ref):
    """One lane-dense queue tile: (N, dim)bf16 @ (dim, TK)bf16 -> f32, scaled by 1/T."""
    out_ref[...] = jnp.dot(q_ref[...], queue_ref[...],
                           preferred_element_type=jnp.float32) * (1.0 / T_TEMP)


# ------------------------------- glue (JAX) ----------------------------------
def im2col_3x3(x):
    """NCHW -> (N, H*W, C*9) patches for a 3x3, stride-1, pad-1 conv."""
    # TODO(synk): at large H/W/C move im2col into the kernel (or feed bf16 patches)
    # to avoid shipping the 9x-expanded, lane-padded patch array through HBM.
    n, c, h, w = x.shape
    xp = jnp.pad(x, ((0, 0), (0, 0), (1, 1), (1, 1)))
    cols = []
    for dh in range(3):
        for dw in range(3):
            cols.append(xp[:, :, dh:dh + h, dw:dw + w])           # (N, C, H, W)
    patches = jnp.stack(cols, axis=2)                             # (N, C, 9, H, W)
    patches = patches.transpose(0, 3, 4, 1, 2).reshape(n, h * w, c * 9)
    return patches


@jax.jit
def moco_forward(im_q, im_k, params, queue_bf16, queue_ptr):
    """Returns (logits, labels, new_queue, new_queue_ptr)."""
    # TODO(synk): _batch_shuffle_ddp / _batch_unshuffle_ddp use torch.distributed;
    # on a single device shuffle + unshuffle cancel, so they are an identity here.
    pq = im2col_3x3(im_q)
    pk = im2col_3x3(im_k)
    patches = jnp.concatenate([pq, pk], axis=0).reshape(2 * N_BATCH * HW, C_IN * 9)

    # Block-diagonal pooling matrix (1/HW entries) -> GAP as an MXU matmul.
    pool_mat = jnp.repeat(jnp.eye(2 * N_BATCH, dtype=jnp.float32), HW, axis=1) / HW

    vmem = pl.BlockSpec(memory_space=pltpu.MemorySpace.VMEM)
    qk, l_pos = pl.pallas_call(
        encoder_kernel,
        out_shape=(jax.ShapeDtypeStruct((2 * N_BATCH, DIM), jnp.float32),  # [q; k]
                   jax.ShapeDtypeStruct((N_BATCH, 1), jnp.float32)),       # l_pos / T
        in_specs=[vmem] * 6,
        out_specs=(vmem, vmem),
    )(patches, pool_mat, params['w_conv'], params['b_conv'],
      params['w_fc'], params['b_fc'])

    q = qk[:N_BATCH]
    k = qk[N_BATCH:]

    # Negatives: grid over queue tiles; lane-dense (N, TK) output blocks; bf16 inputs,
    # f32 accumulation.  "parallel" lets v7x shard the K axis across both TensorCores.
    l_neg = pl.pallas_call(
        lneg_kernel,
        out_shape=jax.ShapeDtypeStruct((N_BATCH, K_QUEUE), jnp.float32),
        grid_spec=pltpu.PrefetchScalarGridSpec(
            num_scalar_prefetch=0,
            grid=(K_QUEUE // TK,),
            in_specs=[pl.BlockSpec((N_BATCH, DIM), lambda j: (0, 0)),
                      pl.BlockSpec((DIM, TK), lambda j: (0, j))],
            out_specs=pl.BlockSpec((N_BATCH, TK), lambda j: (0, j)),
        ),
        compiler_params=pltpu.CompilerParams(dimension_semantics=("parallel",)),
    )(q.astype(jnp.bfloat16), queue_bf16)

    logits = jnp.concatenate([l_pos, l_neg], axis=1)              # (N, 1+K), already /T
    labels = jnp.zeros((N_BATCH,), dtype=jnp.int32)

    # _dequeue_and_enqueue (state update; relies on K % batch == 0, asserted above).
    ptr = queue_ptr[0]
    new_queue = jax.lax.dynamic_update_slice(
        queue_bf16, k.T.astype(queue_bf16.dtype), (0, ptr))
    new_ptr = jnp.array([(ptr + N_BATCH) % K_QUEUE], dtype=jnp.int32)
    return logits, labels, new_queue, new_ptr


# ----------------------------- reference (JAX) --------------------------------
def moco_reference(im_q, im_k, params, queue_f32):
    hi = jax.lax.Precision.HIGHEST

    def encode(x):
        p = im2col_3x3(x)
        h = jnp.einsum('nsp,pc->nsc', p, params['w_conv'], precision=hi)
        h = jnp.maximum(h + params['b_conv'][None, :, :], 0.0)
        pooled = jnp.mean(h, axis=1)
        feat = jnp.dot(pooled, params['w_fc'], precision=hi) + params['b_fc']
        nrm = jnp.sqrt(jnp.sum(feat * feat, axis=1, keepdims=True))
        return feat / jnp.maximum(nrm, EPS)

    q = encode(im_q)
    k = encode(im_k)
    l_pos = jnp.sum(q * k, axis=1, keepdims=True)
    l_neg = jnp.dot(q, queue_f32, precision=hi)
    return jnp.concatenate([l_pos, l_neg], axis=1) / T_TEMP


# --------------------------------- main ---------------------------------------
if __name__ == "__main__":
    key = jax.random.PRNGKey(0)
    k_imq, k_imk, k_wc, k_bc, k_wf, k_bf, k_q = jax.random.split(key, 7)

    im_q = jax.random.normal(k_imq, (N_BATCH, C_IN, H, W), jnp.float32)
    im_k = jax.random.normal(k_imk, (N_BATCH, C_IN, H, W), jnp.float32)

    P = C_IN * 9
    params = {
        'w_conv': jax.random.normal(k_wc, (P, C_HID), jnp.float32) / np.sqrt(P),
        'b_conv': jax.random.normal(k_bc, (1, C_HID), jnp.float32) * 0.01,
        'w_fc':   jax.random.normal(k_wf, (C_HID, DIM), jnp.float32) / np.sqrt(C_HID),
        'b_fc':   jax.random.normal(k_bf, (1, DIM), jnp.float32) * 0.01,
    }

    # queue = normalize(randn(dim, K), dim=0); stored in bf16 (largest operand).
    queue = jax.random.normal(k_q, (DIM, K_QUEUE), jnp.float32)
    queue = queue / jnp.maximum(
        jnp.sqrt(jnp.sum(queue * queue, axis=0, keepdims=True)), EPS)
    queue_bf16 = queue.astype(jnp.bfloat16)
    queue_ptr = jnp.zeros((1,), jnp.int32)

    logits, labels, new_queue, new_ptr = moco_forward(
        im_q, im_k, params, queue_bf16, queue_ptr)
    jax.block_until_ready((logits, labels, new_queue, new_ptr))

    ref_logits = moco_reference(im_q, im_k, params,
                                queue_bf16.astype(jnp.float32))
    assert logits.shape == (N_BATCH, 1 + K_QUEUE)
    assert labels.shape == (N_BATCH,)
    np.testing.assert_allclose(np.asarray(logits), np.asarray(ref_logits),
                               rtol=2e-2, atol=2e-2)
    assert int(new_ptr[0]) == N_BATCH % K_QUEUE
    assert new_queue.shape == (DIM, K_QUEUE)

    print("KERNEL_OK")
</pallas_src>

<mosaic_0001>
module attributes {stable_mosaic.version = 11 : i64} {
  func.func @encoder_kernel(%arg0: memref<1024x36xf32, #tpu.memory_space<vmem>>, %arg1: memref<4x1024xf32, #tpu.memory_space<vmem>>, %arg2: memref<36x32xf32, #tpu.memory_space<vmem>>, %arg3: memref<1x32xf32, #tpu.memory_space<vmem>>, %arg4: memref<32x128xf32, #tpu.memory_space<vmem>>, %arg5: memref<1x128xf32, #tpu.memory_space<vmem>>, %arg6: memref<4x128xf32, #tpu.memory_space<vmem>>, %arg7: memref<2x1xf32, #tpu.memory_space<vmem>>) attributes {dimension_semantics = [], scalar_prefetch = 0 : i64, scratch_operands = 0 : i64, tpu.core_type = #tpu.core_type<tc>} {
    %c0 = arith.constant 0 : index
    %c0_0 = arith.constant 0 : index
    %0 = vector.load %arg0[%c0, %c0_0] : memref<1024x36xf32, #tpu.memory_space<vmem>>, vector<1024x36xf32>
    %c0_1 = arith.constant 0 : index
    %c0_2 = arith.constant 0 : index
    %1 = vector.load %arg2[%c0_1, %c0_2] : memref<36x32xf32, #tpu.memory_space<vmem>>, vector<36x32xf32>
    %cst = arith.constant dense<0.000000e+00> : vector<1024x32xf32>
    %2 = tpu.matmul %0, %1, %cst {dimension_numbers = #tpu.dot_dimension_numbers<[1], [0], [0], [1], [0, 0, 1, 1], [], []>} : vector<1024x36xf32>, vector<36x32xf32>, vector<1024x32xf32> -> vector<1024x32xf32>
    %c0_3 = arith.constant 0 : index
    %c0_4 = arith.constant 0 : index
    %3 = vector.load %arg3[%c0_3, %c0_4] : memref<1x32xf32, #tpu.memory_space<vmem>>, vector<1x32xf32>
    %4 = vector.broadcast %3 : vector<1x32xf32> to vector<1024x32xf32>
    %5 = arith.addf %2, %4 : vector<1024x32xf32>
    %cst_5 = arith.constant 0.000000e+00 : f32
    %6 = vector.broadcast %cst_5 : f32 to vector<1024x32xf32>
    %7 = arith.maximumf %5, %6 : vector<1024x32xf32>
    %c0_6 = arith.constant 0 : index
    %c0_7 = arith.constant 0 : index
    %8 = vector.load %arg1[%c0_6, %c0_7] : memref<4x1024xf32, #tpu.memory_space<vmem>>, vector<4x1024xf32>
    %cst_8 = arith.constant dense<0.000000e+00> : vector<4x32xf32>
    %9 = tpu.matmul %8, %7, %cst_8 {dimension_numbers = #tpu.dot_dimension_numbers<[1], [0], [0], [1], [0, 0, 1, 1], [], []>} : vector<4x1024xf32>, vector<1024x32xf32>, vector<4x32xf32> -> vector<4x32xf32>
    %c0_9 = arith.constant 0 : index
    %c0_10 = arith.constant 0 : index
    %10 = vector.load %arg4[%c0_9, %c0_10] : memref<32x128xf32, #tpu.memory_space<vmem>>, vector<32x128xf32>
    %cst_11 = arith.constant dense<0.000000e+00> : vector<4x128xf32>
    %11 = tpu.matmul %9, %10, %cst_11 {dimension_numbers = #tpu.dot_dimension_numbers<[1], [0], [0], [1], [0, 0, 1, 1], [], []>} : vector<4x32xf32>, vector<32x128xf32>, vector<4x128xf32> -> vector<4x128xf32>
    %c0_12 = arith.constant 0 : index
    %c0_13 = arith.constant 0 : index
    %12 = vector.load %arg5[%c0_12, %c0_13] : memref<1x128xf32, #tpu.memory_space<vmem>>, vector<1x128xf32>
    %13 = vector.broadcast %12 : vector<1x128xf32> to vector<4x128xf32>
    %14 = arith.addf %11, %13 : vector<4x128xf32>
    %15 = arith.mulf %14, %14 : vector<4x128xf32>
    %cst_14 = arith.constant dense<0.000000e+00> : vector<4xf32>
    %16 = vector.multi_reduction <add>, %15, %cst_14 [1] : vector<4x128xf32> to vector<4xf32>
    %17 = vector.shape_cast %16 : vector<4xf32> to vector<4x1xf32>
    %cst_15 = arith.constant 1.000000e-24 : f32
    %18 = vector.broadcast %cst_15 : f32 to vector<4x1xf32>
    %19 = arith.maximumf %17, %18 : vector<4x1xf32>
    %20 = math.rsqrt %19 : vector<4x1xf32>
    %21 = vector.broadcast %20 : vector<4x1xf32> to vector<4x128xf32>
    %22 = arith.mulf %14, %21 : vector<4x128xf32>
    %c0_16 = arith.constant 0 : index
    %c0_17 = arith.constant 0 : index
    %23 = vector.load %arg6[%c0_16, %c0_17] : memref<4x128xf32, #tpu.memory_space<vmem>>, vector<4x128xf32>
    tpu.vector_store %arg6[%c0_16, %c0_17], %22 {strides = array<i32>} : memref<4x128xf32, #tpu.memory_space<vmem>>, vector<4x128xf32>,
    %24 = vector.extract_strided_slice %22 {offsets = [0, 0], sizes = [2, 128], strides = [1, 1]} : vector<4x128xf32> to vector<2x128xf32>
    %25 = vector.extract_strided_slice %22 {offsets = [2, 0], sizes = [2, 128], strides = [1, 1]} : vector<4x128xf32> to vector<2x128xf32>
    %26 = arith.mulf %24, %25 : vector<2x128xf32>
    %cst_18 = arith.constant dense<0.000000e+00> : vector<2xf32>
    %27 = vector.multi_reduction <add>, %26, %cst_18 [1] : vector<2x128xf32> to vector<2xf32>
    %28 = vector.shape_cast %27 : vector<2xf32> to vector<2x1xf32>
    %cst_19 = arith.constant 14.2857141 : f32
    %29 = vector.broadcast %cst_19 : f32 to vector<2x1xf32>
    %30 = arith.mulf %28, %29 : vector<2x1xf32>
    %c0_20 = arith.constant 0 : index
    %c0_21 = arith.constant 0 : index
    %31 = vector.load %arg7[%c0_20, %c0_21] : memref<2x1xf32, #tpu.memory_space<vmem>>, vector<2x1xf32>
    tpu.vector_store %arg7[%c0_20, %c0_21], %30 {strides = array<i32>} : memref<2x1xf32, #tpu.memory_space<vmem>>, vector<2x1xf32>,
    return
  }
}

module attributes {stable_mosaic.version = 11 : i64} {
  func.func @lneg_kernel(%arg0: i32, %arg1: memref<2x128xbf16, #tpu.memory_space<vmem>>, %arg2: memref<128x256xbf16, #tpu.memory_space<vmem>>, %arg3: memref<2x256xf32, #tpu.memory_space<vmem>>) attributes {dimension_semantics = [#tpu.dimension_semantics<parallel>], iteration_bounds = array<i64: 2>, scalar_prefetch = 0 : i64, scratch_operands = 0 : i64, tpu.core_type = #tpu.core_type<tc>, window_params = [{pipeline_mode = #tpu.pipeline_mode<synchronous>, transform_indices = @transform_0, window_bounds = array<i64: 2, 128>}, {transform_indices = @transform_1, window_bounds = array<i64: 128, 256>}, {transform_indices = @transform_2, window_bounds = array<i64: 2, 256>}]} {
    %c0 = arith.constant 0 : index
    %c0_0 = arith.constant 0 : index
    %0 = vector.load %arg1[%c0, %c0_0] : memref<2x128xbf16, #tpu.memory_space<vmem>>, vector<2x128xbf16>
    %c0_1 = arith.constant 0 : index
    %c0_2 = arith.constant 0 : index
    %1 = vector.load %arg2[%c0_1, %c0_2] : memref<128x256xbf16, #tpu.memory_space<vmem>>, vector<128x256xbf16>
    %cst = arith.constant dense<0.000000e+00> : vector<2x256xf32>
    %2 = tpu.matmul %0, %1, %cst {dimension_numbers = #tpu.dot_dimension_numbers<[1], [0], [0], [1], [0, 0, 1, 1], [], []>} : vector<2x128xbf16>, vector<128x256xbf16>, vector<2x256xf32> -> vector<2x256xf32>
    %cst_3 = arith.constant 14.2857141 : f32
    %3 = vector.broadcast %cst_3 : f32 to vector<2x256xf32>
    %4 = arith.mulf %2, %3 : vector<2x256xf32>
    %c0_4 = arith.constant 0 : index
    %c0_5 = arith.constant 0 : index
    %5 = vector.load %arg3[%c0_4, %c0_5] : memref<2x256xf32, #tpu.memory_space<vmem>>, vector<2x256xf32>
    tpu.vector_store %arg3[%c0_4, %c0_5], %4 {strides = array<i32>} : memref<2x256xf32, #tpu.memory_space<vmem>>, vector<2x256xf32>,
    return
  }
  func.func @transform_0(%arg0: i32) -> (i32, i32) {
    %c0_i32 = arith.constant 0 : i32
    %c0_i32_0 = arith.constant 0 : i32
    %c0_i32_1 = arith.constant 0 : i32
    return %c0_i32, %c0_i32_0 : i32, i32
  }
  func.func @transform_1(%arg0: i32) -> (i32, i32) {
    %c0_i32 = arith.constant 0 : i32
    %c0_i32_0 = arith.constant 0 : i32
    return %c0_i32, %arg0 : i32, i32
  }
  func.func @transform_2(%arg0: i32) -> (i32, i32) {
    %c0_i32 = arith.constant 0 : i32
    %c0_i32_0 = arith.constant 0 : i32
    return %c0_i32, %arg0 : i32, i32
  }
}

</mosaic_0001>

<bundles_post_ra>
// kernel: moco_forward.3
= control target key start
LH: loop header
LB: loop body
LE: loop exit
PB: predicated region body
PF: predicated region fallthrough
CT: control target
= control target key end

     0   :  { %s576_s9 = smov 0   ;;  %s578_s10 = smov 0   ;;  %s649_s0 = inlined_call_operand.vmem [shape: bf16[2,128], index: 0, kind: input, shape index: {}]   ;;  %s650_s1 = inlined_call_operand.vmem [shape: bf16[128,512], index: 1, kind: input, shape index: {}]   ;;  %s651_s2 = inlined_call_operand.vmem [shape: f32[2,512], index: 2, kind: output, shape index: {}]  }
   0x1   :  { %s580_s11 = smov 0  }
   0x2 LB: > { %s456_s12 = sadd.s32 4294967295, %s558_s11   ;;  %s593_s13 = sadd.s32 1, %s558_s11   ;;  %s558_s11 = sphi %s580_s11, %s654_s11   ;;  %s554_s10 = sphi %s578_s10, %s653_s10   ;;  %s550_s9 = sphi %s576_s9, %s652_s9  }
   0x3   : > { %s37_s14 = ssub.s32 %s558_s11, %s593_s13  ;;  %s40_s15 = sadd.s32 1, %s554_s10 }
   0x4   : > { %p38_p0 = scmp.eq.s32.totalorder %s37_s14, 0  ;;  %p47_p1 = scmp.ne.s32.totalorder %s554_s10, %s550_s9 }
   0x5   : > { %p48_p2 = scmp.eq.s32.totalorder %s558_s11, 0  ;;  %p459_p4 = scmp.ge.s32.totalorder %s558_s11, 2 }
   0x6   : > { %s602_s16 = scalar_select %p38_p0, %s554_s10, %s40_s15  }
   0x7   : > { %p49_p3 = por %p48_p2, %p47_p1  ;;  %102 = sbr.rel (%p459_p4) target bundleno = 26 (0x1a), region = 20 }
   0xe   : > { %105 = sbr.rel (!%p49_p3) target bundleno = 26 (0x1a), region = 24  ;;  %s107_s17 = sand.u32 (%p49_p3), 1, %s554_s10  }
   0xf   : > { %s486_s18 = sshll.u32 (%p49_p3), %s558_s11, 3  ;;  %s460_s19 = sshll.u32 (%p49_p3), %s107_s17, 7 }
  0x10   : > { %s610_s22 = scalar_lea.vmem (%p49_p3), %s650_s1, %s486_s18  ;;  %s109_s23 = scalar_lea.vmem (%p49_p3), [#allocation2], %s460_s19 }
  0x11   : > { %v170_v0 = vld [vmem:[%s610_s22] sm:$0xff] (%p49_p3)  ;;  %v172_v1 = vld [vmem:[%s610_s22 + $0x10] sm:$0xff] (%p49_p3) }
  0x12   : > { %v174_v2 = vld [vmem:[%s610_s22 + $0x20] sm:$0xff] (%p49_p3)  ;;  %171 = vst [vmem:[%s109_s23] sm:$0xff] (%p49_p3), %v170_v0  ;;  %173 = vst [vmem:[%s109_s23 + $0x8] sm:$0xff] (%p49_p3), %v172_v1  ;;  %v176_v3 = vld [vmem:[%s610_s22 + $0x30] sm:$0xff] (%p49_p3) }
  0x13   : > { %175 = vst [vmem:[%s109_s23 + $0x10] sm:$0xff] (%p49_p3), %v174_v2  ;;  %v178_v4 = vld [vmem:[%s610_s22 + $0x40] sm:$0xff] (%p49_p3)  ;;  %v180_v5 = vld [vmem:[%s610_s22 + $0x50] sm:$0xff] (%p49_p3)  ;;  %177 = vst [vmem:[%s109_s23 + $0x18] sm:$0xff] (%p49_p3), %v176_v3 }
  0x14   : > { %179 = vst [vmem:[%s109_s23 + $0x20] sm:$0xff] (%p49_p3), %v178_v4  ;;  %181 = vst [vmem:[%s109_s23 + $0x28] sm:$0xff] (%p49_p3), %v180_v5  ;;  %v182_v6 = vld [vmem:[%s610_s22 + $0x60] sm:$0xff] (%p49_p3)  ;;  %v184_v7 = vld [vmem:[%s610_s22 + $0x70] sm:$0xff] (%p49_p3) }
  0x15   : > { %v186_v8 = vld [vmem:[%s610_s22 + $0x80] sm:$0xff]  ;;  %183 = vst [vmem:[%s109_s23 + $0x30] sm:$0xff] %v182_v6  ;;  %185 = vst [vmem:[%s109_s23 + $0x38] sm:$0xff] %v184_v7  ;;  %v188_v9 = vld [vmem:[%s610_s22 + $0x90] sm:$0xff] }
  0x16   : > { %187 = vst [vmem:[%s109_s23 + $0x40] sm:$0xff] %v186_v8  ;;  %v190_v10 = vld [vmem:[%s610_s22 + $0xa0] sm:$0xff]  ;;  %v192_v11 = vld [vmem:[%s610_s22 + $0xb0] sm:$0xff]  ;;  %189 = vst [vmem:[%s109_s23 + $0x48] sm:$0xff] %v188_v9 }
  0x17   : > { %191 = vst [vmem:[%s109_s23 + $0x50] sm:$0xff] %v190_v10  ;;  %193 = vst [vmem:[%s109_s23 + $0x58] sm:$0xff] %v192_v11  ;;  %v194_v12 = vld [vmem:[%s610_s22 + $0xc0] sm:$0xff]  ;;  %v196_v13 = vld [vmem:[%s610_s22 + $0xd0] sm:$0xff] }
  0x18   : > { %v198_v14 = vld [vmem:[%s610_s22 + $0xe0] sm:$0xff]  ;;  %195 = vst [vmem:[%s109_s23 + $0x60] sm:$0xff] %v194_v12  ;;  %197 = vst [vmem:[%s109_s23 + $0x68] sm:$0xff] %v196_v13  ;;  %v200_v15 = vld [vmem:[%s610_s22 + $0xf0] sm:$0xff] }
  0x19   : > { %199 = vst [vmem:[%s109_s23 + $0x70] sm:$0xff] %v198_v14  ;;  %201 = vst [vmem:[%s109_s23 + $0x78] sm:$0xff] %v200_v15 }
  0x1a PF: > { %p463_p5 = scmp.ge.s32.totalorder %s558_s11, 1  ;;  %p206_p6 = scmp.lt.s32.totalorder %s558_s11, 3 }
  0x1c   : > { %p207_p7 = pnand %p463_p5, %p206_p6 }
  0x1d   : > { %s213_s24 = sand.u32 (!%p207_p7), 1, %s550_s9   ;;  %v560_v16 = vmov (!%p207_p7), 0   ;;  %v242_v33 = vld [vmem:[%s649_s0] sm:$0x1] (!%p207_p7)  ;;  %s465_s29 = sshll.u32 (!%p207_p7), %s456_s12, 1 }
  0x1e   : > { %210 = sbr.rel (%p207_p7) target bundleno = 283 (0x11b), region = 62  ;;  %s464_s25 = sshll.u32 (!%p207_p7), %s213_s24, 7  ;;  %371 = vmatprep.mubr.bf16.mxu0 (!%p207_p7), %v560_v16 }
  0x1f   : > { %s215_s26 = scalar_lea.vmem (!%p207_p7), [#allocation2], %s464_s25  ;;  %p236_p8 = scmp.lt.s32.totalorder (!%p207_p7), %s465_s29, 3 }
  0x20   : > { %v512_v17 = vld [vmem:[%s215_s26 + $0x4] ss:$8 sps:$4 sm:$0xff] (!%p207_p7)   ;;  %v514_v18 = vld [vmem:[%s215_s26] ss:$8 sps:$4 sm:$0xff] (!%p207_p7)   ;;  %v515_v19 = vld [vmem:[%s215_s26 + $0x14] ss:$8 sps:$4 sm:$0xff] (!%p207_p7)  }
  0x21   : > { %339 = vmatprep.subr.bf16.mxu0 (!%p207_p7), %v512_v17  ;;  %v517_v20 = vld [vmem:[%s215_s26 + $0x10] ss:$8 sps:$4 sm:$0xff] (!%p207_p7)   ;;  %v518_v21 = vld [vmem:[%s215_s26 + $0x24] ss:$8 sps:$4 sm:$0xff] (!%p207_p7)   ;;  %v520_v22 = vld [vmem:[%s215_s26 + $0x20] ss:$8 sps:$4 sm:$0xff] (!%p207_p7)  }
  0x22   : > { %340 = vmatpush1.bf16.msra.mxu0 (!%p207_p7), %v514_v18  ;;  %v521_v23 = vld [vmem:[%s215_s26 + $0x34] ss:$8 sps:$4 sm:$0xff] (!%p207_p7)   ;;  %v523_v24 = vld [vmem:[%s215_s26 + $0x30] ss:$8 sps:$4 sm:$0xff] (!%p207_p7)   ;;  %v524_v25 = vld [vmem:[%s215_s26 + $0x44] ss:$8 sps:$4 sm:$0xff] (!%p207_p7)  }
  0x23   : > { %341 = vmatprep.subr.bf16.mxu0 (!%p207_p7), %v515_v19  ;;  %v526_v26 = vld [vmem:[%s215_s26 + $0x40] ss:$8 sps:$4 sm:$0xff] (!%p207_p7)   ;;  %v527_v27 = vld [vmem:[%s215_s26 + $0x54] ss:$8 sps:$4 sm:$0xff] (!%p207_p7)   ;;  %v529_v28 = vld [vmem:[%s215_s26 + $0x50] ss:$8 sps:$4 sm:$0xff] (!%p207_p7)  }
  0x24   : > { %v530_v29 = vld [vmem:[%s215_s26 + $0x64] ss:$8 sps:$4 sm:$0xff] (!%p207_p7)   ;;  %v532_v30 = vld [vmem:[%s215_s26 + $0x60] ss:$8 sps:$4 sm:$0xff] (!%p207_p7)   ;;  %v533_v31 = vld [vmem:[%s215_s26 + $0x74] ss:$8 sps:$4 sm:$0xff] (!%p207_p7)  }
  0x25   : > { %v535_v32 = vld [vmem:[%s215_s26 + $0x70] ss:$8 sps:$4 sm:$0xff]   ;;  %s656_s29 = smov (!%p236_p8, %s465_s29), 3 }
  0x26   : > { %342 = vmatpush1.bf16.msra.mxu0 %v517_v20  ;;  %s466_s30 = sshll.u32 %s656_s29, 1 }
  0x27   : > { %343 = vmatprep.subr.bf16.mxu0 %v518_v21  ;;  %s239_s5 = scalar_lea.vmem %s651_s2, %s466_s30 }
  0x2a   : > { %344 = vmatpush1.bf16.msra.mxu0 %v520_v22 }
  0x2b   : > { %345 = vmatprep.subr.bf16.mxu0 %v521_v23 }
  0x2e   : > { %346 = vmatpush1.bf16.msra.mxu0 %v523_v24 }
  0x2f   : > { %347 = vmatprep.subr.bf16.mxu0 %v524_v25 }
  0x32   : > { %348 = vmatpush1.bf16.msra.mxu0 %v526_v26 }
  0x33   : > { %349 = vmatprep.subr.bf16.mxu0 %v527_v27 }
  0x36   : > { %350 = vmatpush1.bf16.msra.mxu0 %v529_v28 }
  0x37   : > { %351 = vmatprep.subr.bf16.mxu0 %v530_v29 }
  0x3a   : > { %352 = vmatpush1.bf16.msra.mxu0 %v532_v30 }
  0x3b   : > { %353 = vmatprep.subr.bf16.mxu0 %v533_v31 }
  0x3e   : > { %354 = vmatpush1.bf16.msra.mxu0 %v535_v32 }
  0x41   : > { %372 = vmatmul.mubr.bf16.vlgmr.msra.gmra.mrb[0].mxu0 %v242_v33 }
 0x114   : > { %v373_v34 = vpop.f32.mrb[0].mxu0 }
 0x115   : > { %v380_v35 = vmul.f32 14.285714, %v373_v34  ;;  %v375_v36 = vpop.f32.mrb[1].mxu0 }
 0x116   : > { %v381_v37 = vmul.f32 14.285714, %v375_v36  ;;  %v377_v38 = vpop.f32.mrb[2].mxu0 }
 0x117   : > { %v378_v39 = vpop.f32.mrb[3].mxu0 }
 0x118   : > { %v384_v40 = vcombine.low %v380_v35, %v381_v37 }
 0x11a   : > { %483 = vst.sshfl [vmem:[%s239_s5] sm:$0x33 pattern:$0x76325410] %v384_v40 }
 0x11b PF: > { %p9_p9 = scmp.ge.s32.totalorder %s593_s13, 4   ;;  %s652_s9 = smov %s554_s10 }
 0x11c   : > { %s653_s10 = smov %s602_s16  ;;  %s654_s11 = smov %s593_s13 }
 0x11d   :  { %11 = sbr.rel (!%p9_p9) target bundleno = 2 (0x2), region = 101 }

// kernel: moco_forward.2
= control target key start
LH: loop header
LB: loop body
LE: loop exit
PB: predicated region body
PF: predicated region fallthrough
CT: control target
= control target key end

     0   :  { %vm165_vm0 = vcmask 293888   ;;  %vm550_vm1 = vcmask 1043456   ;;  %vm2576_vm2 = vmmov 0   ;;  %vm1694_vm3 = vcmask 261120   ;;  %s3451_s2 = inlined_call_operand.vmem [shape: f32[36,32], index: 2, kind: input, shape index: {}]   ;;  %s3452_s0 = inlined_call_operand.vmem [shape: f32[1024,36], index: 0, kind: input, shape index: {}]   ;;  %s3453_s1 = inlined_call_operand.vmem [shape: f32[4,1024], index: 1, kind: input, shape index: {}]   ;;  %s3454_s3 = inlined_call_operand.vmem [shape: f32[1,32], index: 3, kind: input, shape index: {}]   ;;  %s3455_s4 = inlined_call_operand.vmem [shape: f32[32,128], index: 4, kind: input, shape index: {}]   ;;  %s3456_s5 = inlined_call_operand.vmem [shape: f32[1,128], index: 5, kind: input, shape index: {}]   ;;  %s3457_s6 = inlined_call_operand.vmem [shape: f32[4,128], index: 6, kind: output, shape index: {0}]   ;;  %s3458_s7 = inlined_call_operand.vmem [shape: f32[2,1], index: 7, kind: output, shape index: {1}]  }
   0x1   :  { %v153_v0 = vld [vmem:[%s3451_s2] sm:$0xff]  ;;  %v154_v1 = vld [vmem:[%s3451_s2 + $0x8] sm:$0xff]  ;;  %v155_v2 = vld [vmem:[%s3451_s2 + $0x10] sm:$0xff]  ;;  %vm1780_vm4 = vcmask 1041408   ;;  %vm1785_vm5 = vcmask 1024  }
   0x2   :  { %v2418_v3 = vpack.c.bf16 %v154_v1, %v153_v0  ;;  %v156_v4 = vld [vmem:[%s3451_s2 + $0x18] sm:$0xff]  ;;  %v25_v5 = vld [vmem:[%s3452_s0] sm:$0xff]  ;;  %v26_v8 = vld [vmem:[%s3452_s0 + $0x8] sm:$0xff] }
   0x3   :  { %v2422_v6 = vpack.c.bf16 %v156_v4, %v155_v2  ;;  %2215 = vmatprep.mubr.msk.f32.mxu0 %vm165_vm0, %v25_v5  ;;  %v157_v7 = vld [vmem:[%s3451_s2 + $0x20] sm:$0xf]  ;;  %v27_v9 = vld [vmem:[%s3452_s0 + $0x10] sm:$0xff]  ;;  %v28_v10 = vld [vmem:[%s3452_s0 + $0x18] sm:$0xff] }
   0x4   :  { %2419 = vmatprep.subr.bf16.mxu0 %v2418_v3  ;;  %2560 = vmatprep.subr.bf16.mxu1 %v2418_v3  ;;  %v29_v11 = vld [vmem:[%s3452_s0 + $0x20] sm:$0xff]  ;;  %v30_v12 = vld [vmem:[%s3452_s0 + $0x28] sm:$0xff]  ;;  %v31_v13 = vld [vmem:[%s3452_s0 + $0x30] sm:$0xff] }
   0x5   :  { %2421 = vmatpush3.bf16.msra.mxu0 %v2418_v3  ;;  %2563 = vmatpush3.bf16.msra.mxu1 %v2418_v3  ;;  %v32_v14 = vld [vmem:[%s3452_s0 + $0x38] sm:$0xff]  ;;  %v33_v15 = vld [vmem:[%s3452_s0 + $0x40] sm:$0xff]  ;;  %v34_v16 = vld [vmem:[%s3452_s0 + $0x48] sm:$0xff] }
   0x6   :  { %2423 = vmatprep.subr.bf16.mxu0 %v2422_v6  ;;  %2561 = vmatprep.subr.bf16.mxu1 %v2422_v6  ;;  %v35_v17 = vld [vmem:[%s3452_s0 + $0x50] sm:$0xff]  ;;  %v36_v18 = vld [vmem:[%s3452_s0 + $0x58] sm:$0xff]  ;;  %v37_v19 = vld [vmem:[%s3452_s0 + $0x60] sm:$0xff] }
   0x7   :  { %v117_v20 = vld [vmem:[%s3452_s0 + $0x2e0] sm:$0xff]  ;;  %v38_v21 = vld [vmem:[%s3452_s0 + $0x68] sm:$0xff]  ;;  %v39_v23 = vld [vmem:[%s3452_s0 + $0x70] sm:$0xff] }
   0x8   :  { %2353 = vmatprep.mubr.msk.f32.mxu1 %vm165_vm0, %v117_v20  ;;  %v118_v22 = vld [vmem:[%s3452_s0 + $0x2e8] sm:$0xff]  ;;  %v119_v24 = vld [vmem:[%s3452_s0 + $0x2f0] sm:$0xff]  ;;  %v40_v25 = vld [vmem:[%s3452_s0 + $0x78] sm:$0xff] }
   0x9   :  { %2425 = vmatpush3.bf16.msra.mxu0 %v2422_v6  ;;  %2564 = vmatpush3.bf16.msra.mxu1 %v2422_v6  ;;  %v120_v26 = vld [vmem:[%s3452_s0 + $0x2f8] sm:$0xff]  ;;  %v41_v27 = vld [vmem:[%s3452_s0 + $0x80] sm:$0xff]  ;;  %v42_v29 = vld [vmem:[%s3452_s0 + $0x88] sm:$0xff] }
   0xa   :  { %2213 = vmatprep.subr.msk.mxu0 %vm550_vm1, %v157_v7  ;;  %2562 = vmatprep.subr.msk.mxu1 %vm550_vm1, %v157_v7  ;;  %v121_v28 = vld [vmem:[%s3452_s0 + $0x300] sm:$0xff]  ;;  %v122_v30 = vld [vmem:[%s3452_s0 + $0x308] sm:$0xff]  ;;  %v43_v31 = vld [vmem:[%s3452_s0 + $0x90] sm:$0xff] }
   0xb   :  { %v123_v32 = vld [vmem:[%s3452_s0 + $0x310] sm:$0xff]  ;;  %v44_v33 = vld [vmem:[%s3452_s0 + $0x98] sm:$0xff]  ;;  %v45_v35 = vld [vmem:[%s3452_s0 + $0xa0] sm:$0xff] }
   0xc   :  { %v124_v34 = vld [vmem:[%s3452_s0 + $0x318] sm:$0xff]  ;;  %v125_v36 = vld [vmem:[%s3452_s0 + $0x320] sm:$0xff]  ;;  %v46_v37 = vld [vmem:[%s3452_s0 + $0xa8] sm:$0xff] }
   0xd   :  { %2214 = vmatpush3.msk.msra.mxu0 %vm550_vm1, %v157_v7  ;;  %2565 = vmatpush3.msk.msra.mxu1 %vm550_vm1, %v157_v7  ;;  %v126_v38 = vld [vmem:[%s3452_s0 + $0x328] sm:$0xff]  ;;  %v47_v39 = vld [vmem:[%s3452_s0 + $0xb0] sm:$0xff]  ;;  %v48_v41 = vld [vmem:[%s3452_s0 + $0xb8] sm:$0xff] }
   0xe   :  { %2216 = vmatmul.mubr.msk.f32.vlgmr.msra.gmra.mrb[0].mxu0 %vm165_vm0, %v26_v8  ;;  %2354 = vmatmul.mubr.msk.f32.vlgmr.msra.gmra.mrb[0].mxu1 %vm165_vm0, %v118_v22  ;;  %v127_v40 = vld [vmem:[%s3452_s0 + $0x330] sm:$0xff]  ;;  %v128_v42 = vld [vmem:[%s3452_s0 + $0x338] sm:$0xff]  ;;  %v49_v43 = vld [vmem:[%s3452_s0 + $0xc0] sm:$0xff] }
   0xf   :  { %2218 = vmatprep.mubr.msk.f32.mxu0 %vm165_vm0, %v27_v9  ;;  %2356 = vmatprep.mubr.msk.f32.mxu1 %vm165_vm0, %v119_v24  ;;  %v129_v44 = vld [vmem:[%s3452_s0 + $0x340] sm:$0xff]  ;;  %v50_v45 = vld [vmem:[%s3452_s0 + $0xc8] sm:$0xff]  ;;  %v51_v47 = vld [vmem:[%s3452_s0 + $0xd0] sm:$0xff] }
  0x10   :  { %v130_v46 = vld [vmem:[%s3452_s0 + $0x348] sm:$0xff]  ;;  %v131_v48 = vld [vmem:[%s3452_s0 + $0x350] sm:$0xff]  ;;  %v52_v49 = vld [vmem:[%s3452_s0 + $0xd8] sm:$0xff] }
  0x11   :  { %v132_v50 = vld [vmem:[%s3452_s0 + $0x358] sm:$0xff]  ;;  %v53_v51 = vld [vmem:[%s3452_s0 + $0xe0] sm:$0xff]  ;;  %v134_v53 = vld [vmem:[%s3452_s0 + $0x368] sm:$0xff] }
  0x12   :  { %2219 = vmatmul.mubr.msk.f32.gmra.mrb[2].mxu0 %vm165_vm0, %v28_v10  ;;  %2357 = vmatmul.mubr.msk.f32.gmra.mrb[2].mxu1 %vm165_vm0, %v120_v26  ;;  %v133_v52 = vld [vmem:[%s3452_s0 + $0x360] sm:$0xff]  ;;  %v135_v54 = vld [vmem:[%s3452_s0 + $0x370] sm:$0xff]  ;;  %v54_v55 = vld [vmem:[%s3452_s0 + $0xe8] sm:$0xff] }
  0x13   :  { %2221 = vmatprep.mubr.msk.f32.mxu0 %vm165_vm0, %v29_v11  ;;  %2359 = vmatprep.mubr.msk.f32.mxu1 %vm165_vm0, %v121_v28  ;;  %v55_v56 = vld [vmem:[%s3452_s0 + $0xf0] sm:$0xff]  ;;  %v136_v57 = vld [vmem:[%s3452_s0 + $0x378] sm:$0xff]  ;;  %v137_v58 = vld [vmem:[%s3452_s0 + $0x380] sm:$0xff] }
  0x14   :  { %v56_v59 = vld [vmem:[%s3452_s0 + $0xf8] sm:$0xff]  ;;  %v57_v60 = vld [vmem:[%s3452_s0 + $0x100] sm:$0xff]  ;;  %v138_v61 = vld [vmem:[%s3452_s0 + $0x388] sm:$0xff] }
  0x15   :  { %v139_v62 = vld [vmem:[%s3452_s0 + $0x390] sm:$0xff]  ;;  %v58_v63 = vld [vmem:[%s3452_s0 + $0x108] sm:$0xff]  ;;  %v140_v1 = vld [vmem:[%s3452_s0 + $0x398] sm:$0xff] }
  0x16   :  { %2222 = vmatmul.mubr.msk.f32.gmra.mrb[4].mxu0 %vm165_vm0, %v30_v12  ;;  %2360 = vmatmul.mubr.msk.f32.gmra.mrb[4].mxu1 %vm165_vm0, %v122_v30  ;;  %v59_v0 = vld [vmem:[%s3452_s0 + $0x110] sm:$0xff]  ;;  %v141_v2 = vld [vmem:[%s3452_s0 + $0x3a0] sm:$0xff]  ;;  %v60_v3 = vld [vmem:[%s3452_s0 + $0x118] sm:$0xff] }
  0x17   :  { %2224 = vmatprep.mubr.msk.f32.mxu0 %vm165_vm0, %v31_v13  ;;  %2362 = vmatprep.mubr.msk.f32.mxu1 %vm165_vm0, %v123_v32  ;;  %v61_v4 = vld [vmem:[%s3452_s0 + $0x120] sm:$0xff]  ;;  %v142_v5 = vld [vmem:[%s3452_s0 + $0x3a8] sm:$0xff]  ;;  %v143_v6 = vld [vmem:[%s3452_s0 + $0x3b0] sm:$0xff] }
  0x18   :  { %v62_v7 = vld [vmem:[%s3452_s0 + $0x128] sm:$0xff]  ;;  %v63_v8 = vld [vmem:[%s3452_s0 + $0x130] sm:$0xff]  ;;  %v144_v9 = vld [vmem:[%s3452_s0 + $0x3b8] sm:$0xff] }
  0x19   :  { %v145_v10 = vld [vmem:[%s3452_s0 + $0x3c0] sm:$0xff]  ;;  %v64_v11 = vld [vmem:[%s3452_s0 + $0x138] sm:$0xff]  ;;  %v146_v13 = vld [vmem:[%s3452_s0 + $0x3c8] sm:$0xff] }
  0x1a   :  { %2225 = vmatmul.mubr.msk.f32.gmra.mrb[6].mxu0 %vm165_vm0, %v32_v14  ;;  %2363 = vmatmul.mubr.msk.f32.gmra.mrb[6].mxu1 %vm165_vm0, %v124_v34  ;;  %v65_v12 = vld [vmem:[%s3452_s0 + $0x140] sm:$0xff]  ;;  %v147_v14 = vld [vmem:[%s3452_s0 + $0x3d0] sm:$0xff]  ;;  %v70_v20 = vld [vmem:[%s3452_s0 + $0x168] sm:$0xff] }
  0x1b   :  { %2227 = vmatprep.mubr.msk.f32.mxu0 %vm165_vm0, %v33_v15  ;;  %2365 = vmatprep.mubr.msk.f32.mxu1 %vm165_vm0, %v125_v36  ;;  %v66_v15 = vld [vmem:[%s3452_s0 + $0x148] sm:$0xff]  ;;  %v71_v22 = vld [vmem:[%s3452_s0 + $0x170] sm:$0xff]  ;;  %v72_v24 = vld [vmem:[%s3452_s0 + $0x178] sm:$0xff] }
  0x1c   :  { %v73_v26 = vld [vmem:[%s3452_s0 + $0x180] sm:$0xff]  ;;  %v74_v28 = vld [vmem:[%s3452_s0 + $0x188] sm:$0xff]  ;;  %v76_v30 = vld [vmem:[%s3452_s0 + $0x198] sm:$0xff] }
  0x1d   :  { %v78_v32 = vld [vmem:[%s3452_s0 + $0x1a8] sm:$0xff]  ;;  %v80_v34 = vld [vmem:[%s3452_s0 + $0x1b8] sm:$0xff] }
  0x1e   :  { %2228 = vmatmul.mubr.msk.f32.gmra.mrb[8].mxu0 %vm165_vm0, %v34_v16  ;;  %2366 = vmatmul.mubr.msk.f32.gmra.mrb[8].mxu1 %vm165_vm0, %v126_v38  ;;  %v67_v16 = vld [vmem:[%s3452_s0 + $0x150] sm:$0xff]  ;;  %v82_v36 = vld [vmem:[%s3452_s0 + $0x1c8] sm:$0xff]  ;;  %v84_v38 = vld [vmem:[%s3452_s0 + $0x1d8] sm:$0xff] }
  0x1f   :  { %2230 = vmatprep.mubr.msk.f32.mxu0 %vm165_vm0, %v35_v17  ;;  %2368 = vmatprep.mubr.msk.f32.mxu1 %vm165_vm0, %v127_v40  ;;  %v68_v17 = vld [vmem:[%s3452_s0 + $0x158] sm:$0xff]  ;;  %v86_v40 = vld [vmem:[%s3452_s0 + $0x1e8] sm:$0xff] }
  0x22   :  { %2231 = vmatmul.mubr.msk.f32.gmra.mrb[10].mxu0 %vm165_vm0, %v36_v18  ;;  %2369 = vmatmul.mubr.msk.f32.gmra.mrb[10].mxu1 %vm165_vm0, %v128_v42  ;;  %v69_v18 = vld [vmem:[%s3452_s0 + $0x160] sm:$0xff]  ;;  %v88_v42 = vld [vmem:[%s3452_s0 + $0x1f8] sm:$0xff] }
  0x23   :  { %2233 = vmatprep.mubr.msk.f32.mxu0 %vm165_vm0, %v37_v19  ;;  %2371 = vmatprep.mubr.msk.f32.mxu1 %vm165_vm0, %v129_v44  ;;  %v148_v19 = vld [vmem:[%s3452_s0 + $0x3d8] sm:$0xff]  ;;  %v90_v44 = vld [vmem:[%s3452_s0 + $0x208] sm:$0xff] }
  0x26   :  { %2234 = vmatmul.mubr.msk.f32.gmra.mrb[12].mxu0 %vm165_vm0, %v38_v21  ;;  %2372 = vmatmul.mubr.msk.f32.gmra.mrb[12].mxu1 %vm165_vm0, %v130_v46  ;;  %v149_v21 = vld [vmem:[%s3452_s0 + $0x3e0] sm:$0xff]  ;;  %v92_v46 = vld [vmem:[%s3452_s0 + $0x218] sm:$0xff] }
  0x27   :  { %2236 = vmatprep.mubr.msk.f32.mxu0 %vm165_vm0, %v39_v23  ;;  %2374 = vmatprep.mubr.msk.f32.mxu1 %vm165_vm0, %v131_v48  ;;  %v150_v23 = vld [vmem:[%s3452_s0 + $0x3e8] sm:$0xff] }
  0x28   :  { %v94_v48 = vld [vmem:[%s3452_s0 + $0x228] sm:$0xff] }
  0x2a   :  { %2237 = vmatmul.mubr.msk.f32.gmra.mrb[14].mxu0 %vm165_vm0, %v40_v25  ;;  %2375 = vmatmul.mubr.msk.f32.gmra.mrb[14].mxu1 %vm165_vm0, %v132_v50  ;;  %v151_v25 = vld [vmem:[%s3452_s0 + $0x3f0] sm:$0xff]  ;;  %v96_v50 = vld [vmem:[%s3452_s0 + $0x238] sm:$0xff] }
  0x2b   :  { %2239 = vmatprep.mubr.msk.f32.mxu0 %vm165_vm0, %v41_v27  ;;  %2377 = vmatprep.mubr.msk.f32.mxu1 %vm165_vm0, %v133_v52  ;;  %v152_v27 = vld [vmem:[%s3452_s0 + $0x3f8] sm:$0xff]  ;;  %v98_v52 = vld [vmem:[%s3452_s0 + $0x248] sm:$0xff] }
  0x2e   :  { %2240 = vmatmul.mubr.msk.f32.gmra.mrb[16].mxu0 %vm165_vm0, %v42_v29  ;;  %2378 = vmatmul.mubr.msk.f32.gmra.mrb[16].mxu1 %vm165_vm0, %v134_v53  ;;  %v75_v29 = vld [vmem:[%s3452_s0 + $0x190] sm:$0xff] }
  0x2f   :  { %2242 = vmatprep.mubr.msk.f32.mxu0 %vm165_vm0, %v43_v31  ;;  %2380 = vmatprep.mubr.msk.f32.mxu1 %vm165_vm0, %v135_v54  ;;  %v77_v31 = vld [vmem:[%s3452_s0 + $0x1a0] sm:$0xff]  ;;  %v99_v53 = vld [vmem:[%s3452_s0 + $0x250] sm:$0xff]  ;;  %v100_v54 = vld [vmem:[%s3452_s0 + $0x258] sm:$0xff] }
  0x32   :  { %2243 = vmatmul.mubr.msk.f32.gmra.mrb[18].mxu0 %vm165_vm0, %v44_v33  ;;  %2381 = vmatmul.mubr.msk.f32.gmra.mrb[18].mxu1 %vm165_vm0, %v136_v57  ;;  %v79_v33 = vld [vmem:[%s3452_s0 + $0x1b0] sm:$0xff] }
  0x33   :  { %2245 = vmatprep.mubr.msk.f32.mxu0 %vm165_vm0, %v45_v35  ;;  %2383 = vmatprep.mubr.msk.f32.mxu1 %vm165_vm0, %v137_v58  ;;  %v81_v35 = vld [vmem:[%s3452_s0 + $0x1c0] sm:$0xff]  ;;  %v103_v57 = vld [vmem:[%s3452_s0 + $0x270] sm:$0xff]  ;;  %v104_v58 = vld [vmem:[%s3452_s0 + $0x278] sm:$0xff] }
  0x36   :  { %2246 = vmatmul.mubr.msk.f32.gmra.mrb[20].mxu0 %vm165_vm0, %v46_v37  ;;  %2384 = vmatmul.mubr.msk.f32.gmra.mrb[20].mxu1 %vm165_vm0, %v138_v61  ;;  %v83_v37 = vld [vmem:[%s3452_s0 + $0x1d0] sm:$0xff] }
  0x37   :  { %2248 = vmatprep.mubr.msk.f32.mxu0 %vm165_vm0, %v47_v39  ;;  %2386 = vmatprep.mubr.msk.f32.mxu1 %vm165_vm0, %v139_v62  ;;  %v85_v39 = vld [vmem:[%s3452_s0 + $0x1e0] sm:$0xff]  ;;  %v107_v61 = vld [vmem:[%s3452_s0 + $0x290] sm:$0xff]  ;;  %v108_v62 = vld [vmem:[%s3452_s0 + $0x298] sm:$0xff] }
  0x3a   :  { %2249 = vmatmul.mubr.msk.f32.gmra.mrb[22].mxu0 %vm165_vm0, %v48_v41  ;;  %2387 = vmatmul.mubr.msk.f32.gmra.mrb[22].mxu1 %vm165_vm0, %v140_v1  ;;  %v87_v41 = vld [vmem:[%s3452_s0 + $0x1f0] sm:$0xff] }
  0x3b   :  { %2251 = vmatprep.mubr.msk.f32.mxu0 %vm165_vm0, %v49_v43  ;;  %2389 = vmatprep.mubr.msk.f32.mxu1 %vm165_vm0, %v141_v2  ;;  %v89_v43 = vld [vmem:[%s3452_s0 + $0x200] sm:$0xff]  ;;  %v111_v1 = vld [vmem:[%s3452_s0 + $0x2b0] sm:$0xff]  ;;  %v112_v2 = vld [vmem:[%s3452_s0 + $0x2b8] sm:$0xff] }
  0x3e   :  { %2252 = vmatmul.mubr.msk.f32.gmra.mrb[24].mxu0 %vm165_vm0, %v50_v45  ;;  %2390 = vmatmul.mubr.msk.f32.gmra.mrb[24].mxu1 %vm165_vm0, %v142_v5  ;;  %v91_v45 = vld [vmem:[%s3452_s0 + $0x210] sm:$0xff] }
  0x3f   :  { %2254 = vmatprep.mubr.msk.f32.mxu0 %vm165_vm0, %v51_v47  ;;  %2392 = vmatprep.mubr.msk.f32.mxu1 %vm165_vm0, %v143_v6  ;;  %v93_v47 = vld [vmem:[%s3452_s0 + $0x220] sm:$0xff]  ;;  %v115_v5 = vld [vmem:[%s3452_s0 + $0x2d0] sm:$0xff]  ;;  %v116_v6 = vld [vmem:[%s3452_s0 + $0x2d8] sm:$0xff] }
  0x42   :  { %2255 = vmatmul.mubr.msk.f32.gmra.mrb[26].mxu0 %vm165_vm0, %v52_v49  ;;  %2393 = vmatmul.mubr.msk.f32.gmra.mrb[26].mxu1 %vm165_vm0, %v144_v9  ;;  %v95_v49 = vld [vmem:[%s3452_s0 + $0x230] sm:$0xff]  ;;  %v3159_v9 = vld [vmem:[%s3454_s3] ss:$0 sm:$0xff] }
  0x43   :  { %2257 = vmatprep.mubr.msk.f32.mxu0 %vm165_vm0, %v53_v51  ;;  %2395 = vmatprep.mubr.msk.f32.mxu1 %vm165_vm0, %v145_v10  ;;  %v97_v51 = vld [vmem:[%s3452_s0 + $0x240] sm:$0xff] }
  0x46   :  { %2258 = vmatmul.mubr.msk.f32.gmra.mrb[28].mxu0 %vm165_vm0, %v54_v55  ;;  %2396 = vmatmul.mubr.msk.f32.gmra.mrb[28].mxu1 %vm165_vm0, %v146_v13  ;;  %v101_v55 = vld [vmem:[%s3452_s0 + $0x260] sm:$0xff] }
  0x47   :  { %2260 = vmatprep.mubr.msk.f32.mxu0 %vm165_vm0, %v55_v56  ;;  %2398 = vmatprep.mubr.msk.f32.mxu1 %vm165_vm0, %v147_v14  ;;  %v102_v56 = vld [vmem:[%s3452_s0 + $0x268] sm:$0xff] }
  0x4a   :  { %2261 = vmatmul.mubr.msk.f32.gmra.mrb[30].mxu0 %vm165_vm0, %v56_v59  ;;  %2399 = vmatmul.mubr.msk.f32.gmra.mrb[30].mxu1 %vm165_vm0, %v148_v19  ;;  %v105_v59 = vld [vmem:[%s3452_s0 + $0x280] sm:$0xff] }
  0x4b   :  { %2263 = vmatprep.mubr.msk.f32.mxu0 %vm165_vm0, %v57_v60  ;;  %2401 = vmatprep.mubr.msk.f32.mxu1 %vm165_vm0, %v149_v21  ;;  %v106_v60 = vld [vmem:[%s3452_s0 + $0x288] sm:$0xff] }
  0x4e   :  { %2264 = vmatmul.mubr.msk.f32.gmra.mrb[32].mxu0 %vm165_vm0, %v58_v63  ;;  %2402 = vmatmul.mubr.msk.f32.gmra.mrb[32].mxu1 %vm165_vm0, %v150_v23  ;;  %v109_v63 = vld [vmem:[%s3452_s0 + $0x2a0] sm:$0xff] }
  0x4f   :  { %2266 = vmatprep.mubr.msk.f32.mxu0 %vm165_vm0, %v59_v0  ;;  %2404 = vmatprep.mubr.msk.f32.mxu1 %vm165_vm0, %v151_v25  ;;  %v110_v0 = vld [vmem:[%s3452_s0 + $0x2a8] sm:$0xff] }
  0x52   :  { %2267 = vmatmul.mubr.msk.f32.gmra.mrb[34].mxu0 %vm165_vm0, %v60_v3  ;;  %2405 = vmatmul.mubr.msk.f32.gmra.mrb[34].mxu1 %vm165_vm0, %v152_v27  ;;  %v113_v3 = vld [vmem:[%s3452_s0 + $0x2c0] sm:$0xff] }
  0x53   :  { %2269 = vmatprep.mubr.msk.f32.mxu0 %vm165_vm0, %v61_v4  ;;  %v114_v4 = vld [vmem:[%s3452_s0 + $0x2c8] sm:$0xff] }
  0x56   :  { %2270 = vmatmul.mubr.msk.f32.gmra.mrb[36].mxu0 %vm165_vm0, %v62_v7  ;;  %v3152_v7 = vld [vmem:[%s3453_s1] sm:$0xff] }
  0x57   :  { %2272 = vmatprep.mubr.msk.f32.mxu0 %vm165_vm0, %v63_v8  ;;  %v1395_v8 = vcombine.high %v3152_v7, %v3152_v7 }
  0x59   :  { %1467 = vmatprep.mubr.f32.mxu1 %v1395_v8 }
  0x5a   :  { %2273 = vmatmul.mubr.msk.f32.gmra.mrb[38].mxu0 %vm165_vm0, %v64_v11 }
  0x5b   :  { %2275 = vmatprep.mubr.msk.f32.mxu0 %vm165_vm0, %v65_v12 }
  0x5e   :  { %2276 = vmatmul.mubr.msk.f32.gmra.mrb[40].mxu0 %vm165_vm0, %v66_v15 }
  0x5f   :  { %2278 = vmatprep.mubr.msk.f32.mxu0 %vm165_vm0, %v67_v16 }
  0x62   :  { %2279 = vmatmul.mubr.msk.f32.gmra.mrb[42].mxu0 %vm165_vm0, %v68_v17 }
  0x63   :  { %2281 = vmatprep.mubr.msk.f32.mxu0 %vm165_vm0, %v69_v18 }
  0x66   :  { %2282 = vmatmul.mubr.msk.f32.gmra.mrb[44].mxu0 %vm165_vm0, %v70_v20 }
  0x67   :  { %2284 = vmatprep.mubr.msk.f32.mxu0 %vm165_vm0, %v71_v22 }
  0x6a   :  { %2285 = vmatmul.mubr.msk.f32.gmra.mrb[46].mxu0 %vm165_vm0, %v72_v24 }
  0x6b   :  { %2287 = vmatprep.mubr.msk.f32.mxu0 %vm165_vm0, %v73_v26 }
  0x6e   :  { %2288 = vmatmul.mubr.msk.f32.gmra.mrb[48].mxu0 %vm165_vm0, %v74_v28 }
  0x6f   :  { %2290 = vmatprep.mubr.msk.f32.mxu0 %vm165_vm0, %v75_v29 }
  0x72   :  { %2291 = vmatmul.mubr.msk.f32.gmra.mrb[50].mxu0 %vm165_vm0, %v76_v30 }
  0x73   :  { %2293 = vmatprep.mubr.msk.f32.mxu0 %vm165_vm0, %v77_v31 }
  0x76   :  { %2294 = vmatmul.mubr.msk.f32.gmra.mrb[52].mxu0 %vm165_vm0, %v78_v32 }
  0x77   :  { %2296 = vmatprep.mubr.msk.f32.mxu0 %vm165_vm0, %v79_v33 }
  0x7a   :  { %2297 = vmatmul.mubr.msk.f32.gmra.mrb[54].mxu0 %vm165_vm0, %v80_v34 }
  0x7b   :  { %2299 = vmatprep.mubr.msk.f32.mxu0 %vm165_vm0, %v81_v35 }
  0x7e   :  { %2300 = vmatmul.mubr.msk.f32.gmra.mrb[56].mxu0 %vm165_vm0, %v82_v36 }
  0x7f   :  { %2302 = vmatprep.mubr.msk.f32.mxu0 %vm165_vm0, %v83_v37 }
  0x82   :  { %2303 = vmatmul.mubr.msk.f32.gmra.mrb[58].mxu0 %vm165_vm0, %v84_v38 }
  0x83   :  { %2305 = vmatprep.mubr.msk.f32.mxu0 %vm165_vm0, %v85_v39 }
  0x86   :  { %2306 = vmatmul.mubr.msk.f32.gmra.mrb[60].mxu0 %vm165_vm0, %v86_v40 }
  0x87   :  { %2308 = vmatprep.mubr.msk.f32.mxu0 %vm165_vm0, %v87_v41 }
  0x8a   :  { %2309 = vmatmul.mubr.msk.f32.gmra.mrb[62].mxu0 %vm165_vm0, %v88_v42 }
  0x8b   :  { %2311 = vmatprep.mubr.msk.f32.mxu0 %vm165_vm0, %v89_v43 }
  0x8e   :  { %2312 = vmatmul.mubr.msk.f32.gmra.mrb[64].mxu0 %vm165_vm0, %v90_v44 }
  0x8f   :  { %2314 = vmatprep.mubr.msk.f32.mxu0 %vm165_vm0, %v91_v45 }
  0x92   :  { %2315 = vmatmul.mubr.msk.f32.gmra.mrb[66].mxu0 %vm165_vm0, %v92_v46 }
  0x93   :  { %2317 = vmatprep.mubr.msk.f32.mxu0 %vm165_vm0, %v93_v47 }
  0x96   :  { %2318 = vmatmul.mubr.msk.f32.gmra.mrb[68].mxu0 %vm165_vm0, %v94_v48 }
  0x97   :  { %2320 = vmatprep.mubr.msk.f32.mxu0 %vm165_vm0, %v95_v49 }
  0x9a   :  { %2321 = vmatmul.mubr.msk.f32.gmra.mrb[70].mxu0 %vm165_vm0, %v96_v50 }
  0x9b   :  { %2323 = vmatprep.mubr.msk.f32.mxu0 %vm165_vm0, %v97_v51 }
  0x9e   :  { %2324 = vmatmul.mubr.msk.f32.gmra.mrb[72].mxu0 %vm165_vm0, %v98_v52 }
  0x9f   :  { %2326 = vmatprep.mubr.msk.f32.mxu0 %vm165_vm0, %v99_v53 }
  0xa2   :  { %2327 = vmatmul.mubr.msk.f32.gmra.mrb[74].mxu0 %vm165_vm0, %v100_v54 }
  0xa3   :  { %2329 = vmatprep.mubr.msk.f32.mxu0 %vm165_vm0, %v101_v55 }
  0xa6   :  { %2330 = vmatmul.mubr.msk.f32.gmra.mrb[76].mxu0 %vm165_vm0, %v102_v56 }
  0xa7   :  { %2332 = vmatprep.mubr.msk.f32.mxu0 %vm165_vm0, %v103_v57 }
  0xaa   :  { %2333 = vmatmul.mubr.msk.f32.gmra.mrb[78].mxu0 %vm165_vm0, %v104_v58 }
  0xab   :  { %2335 = vmatprep.mubr.msk.f32.mxu0 %vm165_vm0, %v105_v59 }
  0xae   :  { %2336 = vmatmul.mubr.msk.f32.gmra.mrb[80].mxu0 %vm165_vm0, %v106_v60 }
  0xaf   :  { %2338 = vmatprep.mubr.msk.f32.mxu0 %vm165_vm0, %v107_v61 }
  0xb2   :  { %2339 = vmatmul.mubr.msk.f32.gmra.mrb[82].mxu0 %vm165_vm0, %v108_v62 }
  0xb3   :  { %2341 = vmatprep.mubr.msk.f32.mxu0 %vm165_vm0, %v109_v63 }
  0xb6   :  { %2342 = vmatmul.mubr.msk.f32.gmra.mrb[84].mxu0 %vm165_vm0, %v110_v0 }
  0xb7   :  { %2344 = vmatprep.mubr.msk.f32.mxu0 %vm165_vm0, %v111_v1 }
  0xba   :  { %2345 = vmatmul.mubr.msk.f32.gmra.mrb[86].mxu0 %vm165_vm0, %v112_v2 }
  0xbb   :  { %2347 = vmatprep.mubr.msk.f32.mxu0 %vm165_vm0, %v113_v3 }
  0xbe   :  { %2348 = vmatmul.mubr.msk.f32.gmra.mrb[88].mxu0 %vm165_vm0, %v114_v4 }
  0xbf   :  { %2350 = vmatprep.mubr.msk.f32.mxu0 %vm165_vm0, %v115_v5 }
  0xc2   :  { %2351 = vmatmul.mubr.msk.f32.gmra.mrb[90].mxu0 %vm165_vm0, %v116_v6 }
  0xe1   :  { %v2217_v10 = vpop.f32.mrb[0].mxu0  ;;  %v2355_v50 = vpop.f32.mrb[0].mxu1 }
  0xe2   :  { %v626_v11 = vadd.f32 %v2217_v10, %v3159_v9  ;;  %v620_v12 = vpop.f32.mrb[1].mxu0  ;;  %v1080_v53 = vpop.f32.mrb[1].mxu1  ;;  %v1086_v56 = vadd.f32 %v2355_v50, %v3159_v9 }
  0xe3   :  { %v621_v13 = vadd.f32 %v3159_v9, %v620_v12  ;;  %v1081_v57 = vadd.f32 %v3159_v9, %v1080_v53 }
  0xe4   :  { %v1260_v14 = vmax.f32 %v626_v11, 0.0  ;;  %v1352_v61 = vmax.f32 %v1086_v56, 0.0 }
  0xe5   :  { %v1259_v15 = vmax.f32 %v621_v13, 0.0  ;;  %v2220_v16 = vpop.f32.mrb[2].mxu0  ;;  %v1351_v62 = vmax.f32 %v1081_v57, 0.0  ;;  %v2358_v63 = vpop.f32.mrb[2].mxu1 }
  0xe6   :  { %v636_v17 = vadd.f32 %v2220_v16, %v3159_v9  ;;  %v630_v18 = vpop.f32.mrb[3].mxu0  ;;  %v1090_v2 = vpop.f32.mrb[3].mxu1  ;;  %v1096_v6 = vadd.f32 %v2358_v63, %v3159_v9 }
  0xe7   :  { %v3164_v19 = vpack.c.bf16 %v1260_v14, %v1259_v15  ;;  %v631_v20 = vadd.f32 %v3159_v9, %v630_v18  ;;  %v3190_v5 = vpack.c.bf16 %v1352_v61, %v1351_v62  ;;  %v1091_v8 = vadd.f32 %v3159_v9, %v1090_v2 }
  0xe8   :  { %v1262_v21 = vmax.f32 %v636_v17, 0.0  ;;  %v1354_v13 = vmax.f32 %v1096_v6, 0.0 }
  0xe9   :  { %v1261_v22 = vmax.f32 %v631_v20, 0.0  ;;  %v2223_v23 = vpop.f32.mrb[4].mxu0  ;;  %v1353_v14 = vmax.f32 %v1091_v8, 0.0  ;;  %v2361_v15 = vpop.f32.mrb[4].mxu1 }
  0xea   :  { %v646_v24 = vadd.f32 %v2223_v23, %v3159_v9  ;;  %v640_v25 = vpop.f32.mrb[5].mxu0  ;;  %v1100_v18 = vpop.f32.mrb[5].mxu1  ;;  %v1106_v23 = vadd.f32 %v2361_v15, %v3159_v9 }
  0xeb   :  { %v3168_v26 = vpack.c.bf16 %v1262_v21, %v1261_v22  ;;  %v641_v27 = vadd.f32 %v3159_v9, %v640_v25  ;;  %v3198_v22 = vpack.c.bf16 %v1354_v13, %v1353_v14 }
  0xec   :  { %v1264_v28 = vmax.f32 %v646_v24, 0.0  ;;  %v1101_v24 = vadd.f32 %v3159_v9, %v1100_v18 }
  0xed   :  { %v1263_v29 = vmax.f32 %v641_v27, 0.0  ;;  %v2226_v30 = vpop.f32.mrb[6].mxu0 }
  0xee   :  { %v656_v31 = vadd.f32 %v2226_v30, %v3159_v9  ;;  %v650_v32 = vpop.f32.mrb[7].mxu0  ;;  %v1355_v30 = vmax.f32 %v1101_v24, 0.0 }
  0xef   :  { %v3172_v33 = vpack.c.bf16 %v1264_v28, %v1263_v29  ;;  %v651_v34 = vadd.f32 %v3159_v9, %v650_v32  ;;  %v1356_v29 = vmax.f32 %v1106_v23, 0.0 }
  0xf0   :  { %v1266_v35 = vmax.f32 %v656_v31, 0.0  ;;  %v2364_v31 = vpop.f32.mrb[6].mxu1 }
  0xf1   :  { %v1265_v36 = vmax.f32 %v651_v34, 0.0  ;;  %v2229_v37 = vpop.f32.mrb[8].mxu0 }
  0xf2   :  { %v666_v38 = vadd.f32 %v2229_v37, %v3159_v9  ;;  %v660_v39 = vpop.f32.mrb[9].mxu0 }
  0xf3   :  { %v3176_v40 = vpack.c.bf16 %v1266_v35, %v1265_v36  ;;  %v661_v41 = vadd.f32 %v3159_v9, %v660_v39  ;;  %v1110_v35 = vpop.f32.mrb[7].mxu1  ;;  %v1116_v39 = vadd.f32 %v2364_v31, %v3159_v9 }
  0xf4   :  { %v1268_v42 = vmax.f32 %v666_v38, 0.0  ;;  %v3206_v38 = vpack.c.bf16 %v1356_v29, %v1355_v30 }
  0xf5   :  { %v1267_v43 = vmax.f32 %v661_v41, 0.0  ;;  %v2232_v44 = vpop.f32.mrb[10].mxu0  ;;  %v1111_v41 = vadd.f32 %v3159_v9, %v1110_v35 }
  0xf6   :  { %v676_v45 = vadd.f32 %v2232_v44, %v3159_v9  ;;  %v670_v46 = vpop.f32.mrb[11].mxu0 }
  0xf7   :  { %v3180_v47 = vpack.c.bf16 %v1268_v42, %v1267_v43  ;;  %v671_v48 = vadd.f32 %v3159_v9, %v670_v46  ;;  %v1357_v46 = vmax.f32 %v1111_v41, 0.0 }
  0xf8   :  { %v1270_v49 = vmax.f32 %v676_v45, 0.0  ;;  %v1358_v45 = vmax.f32 %v1116_v39, 0.0 }
  0xf9   :  { %v1269_v51 = vmax.f32 %v671_v48, 0.0  ;;  %v2235_v52 = vpop.f32.mrb[12].mxu0  ;;  %v2367_v48 = vpop.f32.mrb[8].mxu1 }
  0xfa   :  { %v686_v54 = vadd.f32 %v2235_v52, %v3159_v9  ;;  %v680_v55 = vpop.f32.mrb[13].mxu0 }
  0xfb   :  { %v3186_v58 = vpack.c.bf16 %v1270_v49, %v1269_v51  ;;  %v681_v59 = vadd.f32 %v3159_v9, %v680_v55  ;;  %v1120_v51 = vpop.f32.mrb[9].mxu1  ;;  %v1126_v55 = vadd.f32 %v2367_v48, %v3159_v9 }
  0xfc   :  { %v1272_v60 = vmax.f32 %v686_v54, 0.0  ;;  %v3213_v54 = vpack.c.bf16 %v1358_v45, %v1357_v46  ;;  %v1121_v56 = vadd.f32 %v3159_v9, %v1120_v51  ;;  %v2370_v63 = vpop.f32.mrb[10].mxu1 }
  0xfd   :  { %v1271_v0 = vmax.f32 %v681_v59, 0.0  ;;  %v2238_v1 = vpop.f32.mrb[14].mxu0  ;;  %v1360_v61 = vmax.f32 %v1126_v55, 0.0  ;;  %v1130_v2 = vpop.f32.mrb[11].mxu1  ;;  %v1136_v6 = vadd.f32 %v2370_v63, %v3159_v9 }
  0xfe   :  { %v696_v3 = vadd.f32 %v2238_v1, %v3159_v9  ;;  %v690_v4 = vpop.f32.mrb[15].mxu0  ;;  %v1359_v62 = vmax.f32 %v1121_v56, 0.0  ;;  %v1131_v8 = vadd.f32 %v3159_v9, %v1130_v2 }
  0xff   :  { %v3194_v10 = vpack.c.bf16 %v1272_v60, %v1271_v0  ;;  %v691_v11 = vadd.f32 %v3159_v9, %v690_v4  ;;  %v1362_v14 = vmax.f32 %v1136_v6, 0.0 }
 0x100   :  { %v1274_v12 = vmax.f32 %v696_v3, 0.0  ;;  %v3220_v4 = vpack.c.bf16 %v1360_v61, %v1359_v62  ;;  %v1361_v15 = vmax.f32 %v1131_v8, 0.0 }
 0x101   :  { %v1273_v16 = vmax.f32 %v691_v11, 0.0  ;;  %v2241_v17 = vpop.f32.mrb[16].mxu0 }
 0x102   :  { %v706_v20 = vadd.f32 %v2241_v17, %v3159_v9  ;;  %v700_v21 = vpop.f32.mrb[17].mxu0  ;;  %v3227_v23 = vpack.c.bf16 %v1362_v14, %v1361_v15 }
 0x103   :  { %v3202_v25 = vpack.c.bf16 %v1274_v12, %v1273_v16  ;;  %v701_v27 = vadd.f32 %v3159_v9, %v700_v21  ;;  %v2373_v16 = vpop.f32.mrb[12].mxu1 }
 0x104   :  { %v1276_v28 = vmax.f32 %v706_v20, 0.0  ;;  %v1140_v20 = vpop.f32.mrb[13].mxu1  ;;  %v1146_v24 = vadd.f32 %v2373_v16, %v3159_v9 }
 0x105   :  { %v1275_v32 = vmax.f32 %v701_v27, 0.0  ;;  %v2244_v34 = vpop.f32.mrb[18].mxu0  ;;  %v1141_v27 = vadd.f32 %v3159_v9, %v1140_v20 }
 0x106   :  { %v716_v36 = vadd.f32 %v2244_v34, %v3159_v9  ;;  %v710_v37 = vpop.f32.mrb[19].mxu0  ;;  %v1364_v31 = vmax.f32 %v1146_v24, 0.0  ;;  %v2376_v34 = vpop.f32.mrb[14].mxu1 }
 0x107   :  { %v2426_v42 = vpack.c.bf16 %v1276_v28, %v1275_v32  ;;  %v711_v43 = vadd.f32 %v3159_v9, %v710_v37  ;;  %v1363_v32 = vmax.f32 %v1141_v27, 0.0  ;;  %v1150_v37 = vpop.f32.mrb[15].mxu1 }
 0x108   :  { %v1278_v44 = vmax.f32 %v716_v36, 0.0 }
 0x109   :  { %v1277_v49 = vmax.f32 %v711_v43, 0.0  ;;  %v2247_v50 = vpop.f32.mrb[20].mxu0  ;;  %2427 = vmatprep.subr.bf16.mxu1 %v2426_v42  ;;  %v3234_v41 = vpack.c.bf16 %v1364_v31, %v1363_v32  ;;  %v1156_v42 = vadd.f32 %v2376_v34, %v3159_v9  ;;  %v1151_v43 = vadd.f32 %v3159_v9, %v1150_v37  ;;  %v3263_v34 = vld [vmem:[%s3453_s1 + $0x8] sm:$0xff] }
 0x10a   :  { %v726_v52 = vadd.f32 %v2247_v50, %v3159_v9  ;;  %v720_v53 = vpop.f32.mrb[21].mxu0  ;;  %2429 = vmatpush3.bf16.msra.mxu1 %v3164_v19  ;;  %v2379_v50 = vpop.f32.mrb[16].mxu1 }
 0x10b   :  { %v2430_v57 = vpack.c.bf16 %v1278_v44, %v1277_v49  ;;  %v721_v59 = vadd.f32 %v3159_v9, %v720_v53  ;;  %v1366_v48 = vmax.f32 %v1156_v42, 0.0  ;;  %v1365_v49 = vmax.f32 %v1151_v43, 0.0  ;;  %v1160_v53 = vpop.f32.mrb[17].mxu1 }
 0x10c   :  { %v1280_v60 = vmax.f32 %v726_v52, 0.0  ;;  %v2382_v62 = vpop.f32.mrb[18].mxu1 }
 0x10d   :  { %v1279_v0 = vmax.f32 %v721_v59, 0.0  ;;  %v2250_v1 = vpop.f32.mrb[22].mxu0  ;;  %2431 = vmatprep.subr.bf16.mxu1 %v2430_v57  ;;  %v3241_v56 = vpack.c.bf16 %v1366_v48, %v1365_v49  ;;  %v1166_v57 = vadd.f32 %v2379_v50, %v3159_v9  ;;  %v1161_v59 = vadd.f32 %v3159_v9, %v1160_v53 }
 0x10e   :  { %v736_v3 = vadd.f32 %v2250_v1, %v3159_v9  ;;  %v730_v19 = vpop.f32.mrb[23].mxu0  ;;  %2433 = vmatpush3.bf16.msra.mxu1 %v3168_v26  ;;  %v1176_v2 = vadd.f32 %v2382_v62, %v3159_v9  ;;  %v1396_v48 = vcombine.high %v3263_v34, %v3263_v34 }
 0x10f   :  { %v2434_v11 = vpack.c.bf16 %v1280_v60, %v1279_v0  ;;  %v731_v12 = vadd.f32 %v3159_v9, %v730_v19  ;;  %v1368_v0 = vmax.f32 %v1166_v57, 0.0  ;;  %v1367_v1 = vmax.f32 %v1161_v59, 0.0 }
 0x110   :  { %v1282_v13 = vmax.f32 %v736_v3, 0.0  ;;  %v1170_v3 = vpop.f32.mrb[19].mxu1 }
 0x111   :  { %v1281_v17 = vmax.f32 %v731_v12, 0.0  ;;  %v2253_v18 = vpop.f32.mrb[24].mxu0  ;;  %2435 = vmatprep.subr.bf16.mxu1 %v2434_v11  ;;  %v3250_v12 = vpack.c.bf16 %v1368_v0, %v1367_v1 }
 0x112   :  { %v746_v21 = vadd.f32 %v2253_v18, %v3159_v9  ;;  %v740_v26 = vpop.f32.mrb[25].mxu0  ;;  %2437 = vmatpush3.bf16.msra.mxu1 %v3172_v33 }
 0x113   :  { %v2438_v28 = vpack.c.bf16 %v1282_v13, %v1281_v17  ;;  %v741_v29 = vadd.f32 %v3159_v9, %v740_v26  ;;  %v1370_v13 = vmax.f32 %v1176_v2, 0.0  ;;  %v2385_v17 = vpop.f32.mrb[20].mxu1 }
 0x114   :  { %v1284_v30 = vmax.f32 %v746_v21, 0.0  ;;  %v1186_v20 = vadd.f32 %v2385_v17, %v3159_v9  ;;  %v1180_v21 = vpop.f32.mrb[21].mxu1 }
 0x115   :  { %v1283_v35 = vmax.f32 %v741_v29, 0.0  ;;  %v2256_v36 = vpop.f32.mrb[26].mxu0  ;;  %2439 = vmatprep.subr.bf16.mxu1 %v2438_v28  ;;  %v1181_v28 = vadd.f32 %v3159_v9, %v1180_v21 }
 0x116   :  { %v756_v39 = vadd.f32 %v2256_v36, %v3159_v9  ;;  %v750_v33 = vpop.f32.mrb[27].mxu0  ;;  %2441 = vmatpush3.bf16.msra.mxu1 %v3176_v40  ;;  %v2388_v36 = vpop.f32.mrb[22].mxu1 }
 0x117   :  { %v2442_v44 = vpack.c.bf16 %v1284_v30, %v1283_v35  ;;  %v751_v45 = vadd.f32 %v3159_v9, %v750_v33  ;;  %v1372_v30 = vmax.f32 %v1186_v20, 0.0  ;;  %v1371_v35 = vmax.f32 %v1181_v28, 0.0  ;;  %v1190_v33 = vpop.f32.mrb[23].mxu1 }
 0x118   :  { %v1286_v46 = vmax.f32 %v756_v39, 0.0  ;;  %v1196_v39 = vadd.f32 %v2388_v36, %v3159_v9  ;;  %v2391_v53 = vpop.f32.mrb[24].mxu1 }
 0x119   :  { %v1285_v51 = vmax.f32 %v751_v45, 0.0  ;;  %v2259_v52 = vpop.f32.mrb[28].mxu0  ;;  %2443 = vmatprep.subr.bf16.mxu1 %v2442_v44  ;;  %v3266_v44 = vpack.c.bf16 %v1372_v30, %v1371_v35  ;;  %v1200_v57 = vpop.f32.mrb[25].mxu1 }
 0x11a   :  { %v766_v55 = vadd.f32 %v2259_v52, %v3159_v9  ;;  %v760_v40 = vpop.f32.mrb[29].mxu0  ;;  %2445 = vmatpush3.bf16.msra.mxu1 %v3180_v47  ;;  %v1171_v47 = vadd.f32 %v3159_v9, %v1170_v3  ;;  %v1374_v49 = vmax.f32 %v1196_v39, 0.0 }
 0x11b   :  { %v2446_v60 = vpack.c.bf16 %v1286_v46, %v1285_v51  ;;  %v761_v61 = vadd.f32 %v3159_v9, %v760_v40  ;;  %v1206_v40 = vadd.f32 %v2391_v53, %v3159_v9 }
 0x11c   :  { %v1288_v63 = vmax.f32 %v766_v55, 0.0  ;;  %v1369_v16 = vmax.f32 %v1171_v47, 0.0 }
 0x11d   :  { %v1287_v19 = vmax.f32 %v761_v61, 0.0  ;;  %v2262_v6 = vpop.f32.mrb[30].mxu0  ;;  %2447 = vmatprep.subr.bf16.mxu1 %v2446_v60  ;;  %v1376_v0 = vmax.f32 %v1206_v40, 0.0 }
 0x11e   :  { %v776_v8 = vadd.f32 %v2262_v6, %v3159_v9  ;;  %v770_v11 = vpop.f32.mrb[31].mxu0  ;;  %2449 = vmatpush3.bf16.msra.mxu1 %v3186_v58  ;;  %v3254_v27 = vpack.c.bf16 %v1370_v13, %v1369_v16 }
 0x11f   :  { %v2450_v14 = vpack.c.bf16 %v1288_v63, %v1287_v19  ;;  %v771_v15 = vadd.f32 %v3159_v9, %v770_v11  ;;  %v2394_v19 = vpop.f32.mrb[26].mxu1 }
 0x120   :  { %v1290_v18 = vmax.f32 %v776_v8, 0.0  ;;  %v1216_v47 = vadd.f32 %v2394_v19, %v3159_v9  ;;  %v1210_v8 = vpop.f32.mrb[27].mxu1 }
 0x121   :  { %v1289_v26 = vmax.f32 %v771_v15, 0.0  ;;  %v2265_v24 = vpop.f32.mrb[32].mxu0  ;;  %2451 = vmatprep.subr.bf16.mxu1 %v2450_v14  ;;  %v1211_v14 = vadd.f32 %v3159_v9, %v1210_v8 }
 0x122   :  { %v786_v58 = vadd.f32 %v2265_v24, %v3159_v9  ;;  %v780_v29 = vpop.f32.mrb[33].mxu0  ;;  %2453 = vmatpush3.bf16.msra.mxu1 %v3194_v10  ;;  %v1191_v10 = vadd.f32 %v3159_v9, %v1190_v33  ;;  %v1378_v17 = vmax.f32 %v1216_v47, 0.0 }
 0x123   :  { %v2454_v31 = vpack.c.bf16 %v1290_v18, %v1289_v26  ;;  %v781_v32 = vadd.f32 %v3159_v9, %v780_v29  ;;  %v1377_v21 = vmax.f32 %v1211_v14, 0.0  ;;  %v2397_v26 = vpop.f32.mrb[28].mxu1 }
 0x124   :  { %v1292_v37 = vmax.f32 %v786_v58, 0.0  ;;  %v1373_v52 = vmax.f32 %v1191_v10, 0.0  ;;  %v1226_v28 = vadd.f32 %v2397_v26, %v3159_v9  ;;  %v1220_v58 = vpop.f32.mrb[29].mxu1 }
 0x125   :  { %v1291_v42 = vmax.f32 %v781_v32, 0.0  ;;  %v2268_v43 = vpop.f32.mrb[34].mxu0  ;;  %2455 = vmatprep.subr.bf16.mxu1 %v2454_v31  ;;  %v3294_v31 = vpack.c.bf16 %v1378_v17, %v1377_v21  ;;  %v1221_v32 = vadd.f32 %v3159_v9, %v1220_v58  ;;  %v2400_v10 = vpop.f32.mrb[30].mxu1 }
 0x126   :  { %v796_v45 = vadd.f32 %v2268_v43, %v3159_v9  ;;  %v790_v46 = vpop.f32.mrb[35].mxu0  ;;  %2457 = vmatpush3.bf16.msra.mxu1 %v3202_v25  ;;  %v3278_v61 = vpack.c.bf16 %v1374_v49, %v1373_v52  ;;  %v1201_v25 = vadd.f32 %v3159_v9, %v1200_v57  ;;  %v1236_v49 = vadd.f32 %v2400_v10, %v3159_v9 }
 0x127   :  { %v3273_v50 = vpack.c.bf16 %v1292_v37, %v1291_v42  ;;  %v791_v51 = vadd.f32 %v3159_v9, %v790_v46  ;;  %v1380_v37 = vmax.f32 %v1226_v28, 0.0  ;;  %v1379_v42 = vmax.f32 %v1221_v32, 0.0 }
 0x128   :  { %v1294_v55 = vmax.f32 %v796_v45, 0.0  ;;  %v1375_v3 = vmax.f32 %v1201_v25, 0.0 }
 0x129   :  { %v1293_v59 = vmax.f32 %v791_v51, 0.0  ;;  %v2271_v60 = vpop.f32.mrb[36].mxu0  ;;  %1468 = vmatmul.mubr.f32.vlgmr.msra.gmra.mrb[36].mxu1 %v3152_v7  ;;  %v1230_v51 = vpop.f32.mrb[31].mxu1 }
 0x12a   :  { %v806_v62 = vadd.f32 %v2271_v60, %v3159_v9  ;;  %v800_v63 = vpop.f32.mrb[37].mxu0  ;;  %1537 = vmatprep.mubr.f32.mxu1 %v1396_v48  ;;  %v3286_v13 = vpack.c.bf16 %v1376_v0, %v1375_v3  ;;  %v3301_v48 = vpack.c.bf16 %v1380_v37, %v1379_v42 }
 0x12b   :  { %v3282_v1 = vpack.c.bf16 %v1294_v55, %v1293_v59  ;;  %v801_v2 = vadd.f32 %v3159_v9, %v800_v63  ;;  %v1231_v55 = vadd.f32 %v3159_v9, %v1230_v51  ;;  %v1382_v59 = vmax.f32 %v1236_v49, 0.0 }
 0x12c   :  { %v1296_v6 = vmax.f32 %v806_v62, 0.0  ;;  %v2403_v62 = vpop.f32.mrb[32].mxu1 }
 0x12d   :  { %v1295_v7 = vmax.f32 %v801_v2, 0.0  ;;  %v2274_v11 = vpop.f32.mrb[38].mxu0  ;;  %v1381_v25 = vmax.f32 %v1231_v55, 0.0  ;;  %v1246_v2 = vadd.f32 %v2403_v62, %v3159_v9  ;;  %v1240_v3 = vpop.f32.mrb[33].mxu1 }
 0x12e   :  { %v816_v15 = vadd.f32 %v2274_v11, %v3159_v9  ;;  %v810_v16 = vpop.f32.mrb[39].mxu0  ;;  %v1241_v8 = vadd.f32 %v3159_v9, %v1240_v3  ;;  %v2406_v17 = vpop.f32.mrb[34].mxu1 }
 0x12f   :  { %v3290_v18 = vpack.c.bf16 %v1296_v6, %v1295_v7  ;;  %v811_v20 = vadd.f32 %v3159_v9, %v810_v16  ;;  %v3311_v47 = vpack.c.bf16 %v1382_v59, %v1381_v25  ;;  %v1384_v14 = vmax.f32 %v1246_v2, 0.0 }
 0x130   :  { %v1298_v24 = vmax.f32 %v816_v15, 0.0  ;;  %v1383_v16 = vmax.f32 %v1241_v8, 0.0  ;;  %v1256_v26 = vadd.f32 %v2406_v17, %v3159_v9 }
 0x131   :  { %v1297_v29 = vmax.f32 %v811_v20, 0.0  ;;  %v2277_v30 = vpop.f32.mrb[40].mxu0 }
 0x132   :  { %v826_v35 = vadd.f32 %v2277_v30, %v3159_v9  ;;  %v820_v36 = vpop.f32.mrb[41].mxu0 }
 0x133   :  { %v3298_v39 = vpack.c.bf16 %v1298_v24, %v1297_v29  ;;  %v821_v33 = vadd.f32 %v3159_v9, %v820_v36  ;;  %v1250_v24 = vpop.f32.mrb[35].mxu1  ;;  %v3319_v29 = vpack.c.bf16 %v1384_v14, %v1383_v16  ;;  %v1386_v36 = vmax.f32 %v1256_v26, 0.0 }
 0x134   :  { %v1300_v43 = vmax.f32 %v826_v35, 0.0  ;;  %v1251_v30 = vadd.f32 %v3159_v9, %v1250_v24 }
 0x135   :  { %v1299_v45 = vmax.f32 %v821_v33, 0.0  ;;  %v2280_v46 = vpop.f32.mrb[42].mxu0 }
 0x136   :  { %v836_v52 = vadd.f32 %v2280_v46, %v3159_v9  ;;  %v830_v53 = vpop.f32.mrb[43].mxu0  ;;  %v1385_v33 = vmax.f32 %v1251_v30, 0.0 }
 0x137   :  { %v3306_v40 = vpack.c.bf16 %v1300_v43, %v1299_v45  ;;  %v831_v57 = vadd.f32 %v3159_v9, %v830_v53 }
 0x138   :  { %v1302_v60 = vmax.f32 %v836_v52, 0.0  ;;  %v3326_v46 = vpack.c.bf16 %v1386_v36, %v1385_v33 }
 0x139   :  { %v1301_v63 = vmax.f32 %v831_v57, 0.0  ;;  %v2283_v0 = vpop.f32.mrb[44].mxu0 }
 0x13a   :  { %v846_v19 = vadd.f32 %v2283_v0, %v3159_v9  ;;  %v840_v6 = vpop.f32.mrb[45].mxu0 }
 0x13b   :  { %v3314_v7 = vpack.c.bf16 %v1302_v60, %v1301_v63  ;;  %v841_v11 = vadd.f32 %v3159_v9, %v840_v6 }
 0x13c   :  { %v1304_v15 = vmax.f32 %v846_v19, 0.0 }
 0x13d   :  { %v1303_v20 = vmax.f32 %v841_v11, 0.0  ;;  %v2286_v21 = vpop.f32.mrb[46].mxu0 }
 0x13e   :  { %v856_v28 = vadd.f32 %v2286_v21, %v3159_v9  ;;  %v850_v58 = vpop.f32.mrb[47].mxu0 }
 0x13f   :  { %v3322_v32 = vpack.c.bf16 %v1304_v15, %v1303_v20  ;;  %v851_v35 = vadd.f32 %v3159_v9, %v850_v58 }
 0x140   :  { %v1306_v37 = vmax.f32 %v856_v28, 0.0 }
 0x141   :  { %v1305_v42 = vmax.f32 %v851_v35, 0.0  ;;  %v2289_v43 = vpop.f32.mrb[48].mxu0 }
 0x142   :  { %v866_v10 = vadd.f32 %v2289_v43, %v3159_v9  ;;  %v860_v45 = vpop.f32.mrb[49].mxu0 }
 0x143   :  { %v3328_v49 = vpack.c.bf16 %v1306_v37, %v1305_v42  ;;  %v861_v51 = vadd.f32 %v3159_v9, %v860_v45 }
 0x144   :  { %v1308_v52 = vmax.f32 %v866_v10, 0.0 }
 0x145   :  { %v1307_v53 = vmax.f32 %v861_v51, 0.0  ;;  %v2292_v55 = vpop.f32.mrb[50].mxu0 }
 0x146   :  { %v876_v57 = vadd.f32 %v2292_v55, %v3159_v9  ;;  %v870_v59 = vpop.f32.mrb[51].mxu0 }
 0x147   :  { %v2458_v60 = vpack.c.bf16 %v1308_v52, %v1307_v53  ;;  %v871_v25 = vadd.f32 %v3159_v9, %v870_v59 }
 0x148   :  { %v1310_v62 = vmax.f32 %v876_v57, 0.0 }
 0x149   :  { %v1309_v63 = vmax.f32 %v871_v25, 0.0  ;;  %v2295_v0 = vpop.f32.mrb[52].mxu0  ;;  %2459 = vmatprep.subr.bf16.mxu1 %v2458_v60 }
 0x14a   :  { %v886_v2 = vadd.f32 %v2295_v0, %v3159_v9  ;;  %v880_v3 = vpop.f32.mrb[53].mxu0  ;;  %2461 = vmatpush3.bf16.msra.mxu1 %v3273_v50 }
 0x14b   :  { %v2462_v19 = vpack.c.bf16 %v1310_v62, %v1309_v63  ;;  %v881_v6 = vadd.f32 %v3159_v9, %v880_v3 }
 0x14c   :  { %v1312_v8 = vmax.f32 %v886_v2, 0.0 }
 0x14d   :  { %v1311_v11 = vmax.f32 %v881_v6, 0.0  ;;  %v2298_v14 = vpop.f32.mrb[54].mxu0  ;;  %2463 = vmatprep.subr.bf16.mxu1 %v2462_v19 }
 0x14e   :  { %v896_v15 = vadd.f32 %v2298_v14, %v3159_v9  ;;  %v890_v16 = vpop.f32.mrb[55].mxu0  ;;  %2465 = vmatpush3.bf16.msra.mxu1 %v3282_v1 }
 0x14f   :  { %v2466_v17 = vpack.c.bf16 %v1312_v8, %v1311_v11  ;;  %v891_v20 = vadd.f32 %v3159_v9, %v890_v16  ;;  %v3357_v11 = vld [vmem:[%s3453_s1 + $0x10] sm:$0xff] }
 0x150   :  { %v1314_v21 = vmax.f32 %v896_v15, 0.0 }
 0x151   :  { %v1313_v26 = vmax.f32 %v891_v20, 0.0  ;;  %v2301_v24 = vpop.f32.mrb[56].mxu0  ;;  %2467 = vmatprep.subr.bf16.mxu1 %v2466_v17 }
 0x152   :  { %v906_v50 = vadd.f32 %v2301_v24, %v3159_v9  ;;  %v900_v28 = vpop.f32.mrb[57].mxu0  ;;  %2469 = vmatpush3.bf16.msra.mxu1 %v3290_v18 }
 0x153   :  { %v2470_v58 = vpack.c.bf16 %v1314_v21, %v1313_v26  ;;  %v901_v30 = vadd.f32 %v3159_v9, %v900_v28 }
 0x154   :  { %v1316_v35 = vmax.f32 %v906_v50, 0.0 }
 0x155   :  { %v1315_v36 = vmax.f32 %v901_v30, 0.0  ;;  %v2304_v37 = vpop.f32.mrb[58].mxu0  ;;  %2471 = vmatprep.subr.bf16.mxu1 %v2470_v58 }
 0x156   :  { %v916_v1 = vadd.f32 %v2304_v37, %v3159_v9  ;;  %v910_v33 = vpop.f32.mrb[59].mxu0  ;;  %2473 = vmatpush3.bf16.msra.mxu1 %v3298_v39 }
 0x157   :  { %v2474_v42 = vpack.c.bf16 %v1316_v35, %v1315_v36  ;;  %v911_v43 = vadd.f32 %v3159_v9, %v910_v33 }
 0x158   :  { %v1318_v10 = vmax.f32 %v916_v1, 0.0 }
 0x159   :  { %v1317_v45 = vmax.f32 %v911_v43, 0.0  ;;  %v2307_v51 = vpop.f32.mrb[60].mxu0  ;;  %2475 = vmatprep.subr.bf16.mxu1 %v2474_v42 }
 0x15a   :  { %v926_v18 = vadd.f32 %v2307_v51, %v3159_v9  ;;  %v920_v52 = vpop.f32.mrb[61].mxu0  ;;  %2477 = vmatpush3.bf16.msra.mxu1 %v3306_v40 }
 0x15b   :  { %v2478_v53 = vpack.c.bf16 %v1318_v10, %v1317_v45  ;;  %v921_v55 = vadd.f32 %v3159_v9, %v920_v52 }
 0x15c   :  { %v1320_v57 = vmax.f32 %v926_v18, 0.0 }
 0x15d   :  { %v1319_v59 = vmax.f32 %v921_v55, 0.0  ;;  %v2310_v60 = vpop.f32.mrb[62].mxu0  ;;  %2479 = vmatprep.subr.bf16.mxu1 %v2478_v53 }
 0x15e   :  { %v936_v39 = vadd.f32 %v2310_v60, %v3159_v9  ;;  %v930_v25 = vpop.f32.mrb[63].mxu0  ;;  %2481 = vmatpush3.bf16.msra.mxu1 %v3314_v7 }
 0x15f   :  { %v2482_v62 = vpack.c.bf16 %v1320_v57, %v1319_v59  ;;  %v931_v63 = vadd.f32 %v3159_v9, %v930_v25 }
 0x160   :  { %v1322_v0 = vmax.f32 %v936_v39, 0.0 }
 0x161   :  { %v1321_v2 = vmax.f32 %v931_v63, 0.0  ;;  %v2313_v3 = vpop.f32.mrb[64].mxu0  ;;  %2483 = vmatprep.subr.bf16.mxu1 %v2482_v62 }
 0x162   :  { %v946_v40 = vadd.f32 %v2313_v3, %v3159_v9  ;;  %v940_v19 = vpop.f32.mrb[65].mxu0  ;;  %2485 = vmatpush3.bf16.msra.mxu1 %v3322_v32  ;;  %v1397_v32 = vcombine.high %v3357_v11, %v3357_v11 }
 0x163   :  { %v2486_v6 = vpack.c.bf16 %v1322_v0, %v1321_v2  ;;  %v941_v8 = vadd.f32 %v3159_v9, %v940_v19 }
 0x164   :  { %v1324_v7 = vmax.f32 %v946_v40, 0.0 }
 0x165   :  { %v1323_v14 = vmax.f32 %v941_v8, 0.0  ;;  %v2316_v15 = vpop.f32.mrb[66].mxu0  ;;  %2487 = vmatprep.subr.bf16.mxu1 %v2486_v6 }
 0x166   :  { %v956_v16 = vadd.f32 %v2316_v15, %v3159_v9  ;;  %v950_v17 = vpop.f32.mrb[67].mxu0  ;;  %2489 = vmatpush3.bf16.msra.mxu1 %v3328_v49 }
 0x167   :  { %v3363_v20 = vpack.c.bf16 %v1324_v7, %v1323_v14  ;;  %v951_v21 = vadd.f32 %v3159_v9, %v950_v17 }
 0x168   :  { %v1326_v26 = vmax.f32 %v956_v16, 0.0 }
 0x169   :  { %v1325_v24 = vmax.f32 %v951_v21, 0.0  ;;  %v2319_v50 = vpop.f32.mrb[68].mxu0  ;;  %1538 = vmatmul.mubr.f32.vlgmr.msra.gmra.mrb[38].mxu1 %v3263_v34 }
 0x16a   :  { %v966_v28 = vadd.f32 %v2319_v50, %v3159_v9  ;;  %v960_v58 = vpop.f32.mrb[69].mxu0  ;;  %1607 = vmatprep.mubr.f32.mxu1 %v1397_v32 }
 0x16b   :  { %v3368_v30 = vpack.c.bf16 %v1326_v26, %v1325_v24  ;;  %v961_v49 = vadd.f32 %v3159_v9, %v960_v58 }
 0x16c   :  { %v1328_v35 = vmax.f32 %v966_v28, 0.0 }
 0x16d   :  { %v1327_v36 = vmax.f32 %v961_v49, 0.0  ;;  %v2322_v37 = vpop.f32.mrb[70].mxu0 }
 0x16e   :  { %v976_v1 = vadd.f32 %v2322_v37, %v3159_v9  ;;  %v970_v33 = vpop.f32.mrb[71].mxu0 }
 0x16f   :  { %v3372_v42 = vpack.c.bf16 %v1328_v35, %v1327_v36  ;;  %v971_v43 = vadd.f32 %v3159_v9, %v970_v33 }
 0x170   :  { %v1330_v10 = vmax.f32 %v976_v1, 0.0 }
 0x171   :  { %v1329_v34 = vmax.f32 %v971_v43, 0.0  ;;  %v2325_v45 = vpop.f32.mrb[72].mxu0 }
 0x172   :  { %v986_v51 = vadd.f32 %v2325_v45, %v3159_v9  ;;  %v980_v18 = vpop.f32.mrb[73].mxu0 }
 0x173   :  { %v3376_v52 = vpack.c.bf16 %v1330_v10, %v1329_v34  ;;  %v981_v53 = vadd.f32 %v3159_v9, %v980_v18 }
 0x174   :  { %v1332_v55 = vmax.f32 %v986_v51, 0.0 }
 0x175   :  { %v1331_v57 = vmax.f32 %v981_v53, 0.0  ;;  %v2328_v59 = vpop.f32.mrb[74].mxu0 }
 0x176   :  { %v996_v60 = vadd.f32 %v2328_v59, %v3159_v9  ;;  %v990_v39 = vpop.f32.mrb[75].mxu0 }
 0x177   :  { %v3380_v25 = vpack.c.bf16 %v1332_v55, %v1331_v57  ;;  %v991_v62 = vadd.f32 %v3159_v9, %v990_v39 }
 0x178   :  { %v1334_v63 = vmax.f32 %v996_v60, 0.0 }
 0x179   :  { %v1333_v0 = vmax.f32 %v991_v62, 0.0  ;;  %v2331_v2 = vpop.f32.mrb[76].mxu0 }
 0x17a   :  { %v1006_v3 = vadd.f32 %v2331_v2, %v3159_v9  ;;  %v1000_v40 = vpop.f32.mrb[77].mxu0 }
 0x17b   :  { %v3384_v19 = vpack.c.bf16 %v1334_v63, %v1333_v0  ;;  %v1001_v6 = vadd.f32 %v3159_v9, %v1000_v40 }
 0x17c   :  { %v1336_v8 = vmax.f32 %v1006_v3, 0.0 }
 0x17d   :  { %v1335_v7 = vmax.f32 %v1001_v6, 0.0  ;;  %v2334_v14 = vpop.f32.mrb[78].mxu0 }
 0x17e   :  { %v1016_v15 = vadd.f32 %v2334_v14, %v3159_v9  ;;  %v1010_v16 = vpop.f32.mrb[79].mxu0 }
 0x17f   :  { %v2516_v17 = vpack.c.bf16 %v1336_v8, %v1335_v7  ;;  %v1011_v32 = vadd.f32 %v3159_v9, %v1010_v16 }
 0x180   :  { %v1338_v21 = vmax.f32 %v1016_v15, 0.0 }
 0x181   :  { %v1337_v26 = vmax.f32 %v1011_v32, 0.0  ;;  %v2337_v24 = vpop.f32.mrb[80].mxu0 }
 0x182   :  { %v1026_v50 = vadd.f32 %v2337_v24, %v3159_v9  ;;  %v1020_v28 = vpop.f32.mrb[81].mxu0 }
 0x183   :  { %v2520_v58 = vpack.c.bf16 %v1338_v21, %v1337_v26  ;;  %v1021_v49 = vadd.f32 %v3159_v9, %v1020_v28 }
 0x184   :  { %v1340_v35 = vmax.f32 %v1026_v50, 0.0 }
 0x185   :  { %v1339_v36 = vmax.f32 %v1021_v49, 0.0  ;;  %v2340_v37 = vpop.f32.mrb[82].mxu0  ;;  %v1925_v49 = vld [vmem:[%s3456_s5] ss:$0 sm:$0xff] }
 0x186   :  { %v1036_v1 = vadd.f32 %v2340_v37, %v3159_v9  ;;  %v1030_v33 = vpop.f32.mrb[83].mxu0 }
 0x187   :  { %v2490_v43 = vpack.c.bf16 %v1340_v35, %v1339_v36  ;;  %v1031_v10 = vadd.f32 %v3159_v9, %v1030_v33 }
 0x188   :  { %v1342_v34 = vmax.f32 %v1036_v1, 0.0 }
 0x189   :  { %v1341_v45 = vmax.f32 %v1031_v10, 0.0  ;;  %v2343_v51 = vpop.f32.mrb[84].mxu0  ;;  %2491 = vmatprep.subr.bf16.mxu1 %v2490_v43 }
 0x18a   :  { %v1046_v18 = vadd.f32 %v2343_v51, %v3159_v9  ;;  %v1040_v53 = vpop.f32.mrb[85].mxu0  ;;  %2493 = vmatpush3.bf16.msra.mxu1 %v3363_v20 }
 0x18b   :  { %v2494_v55 = vpack.c.bf16 %v1342_v34, %v1341_v45  ;;  %v1041_v57 = vadd.f32 %v3159_v9, %v1040_v53 }
 0x18c   :  { %v1344_v59 = vmax.f32 %v1046_v18, 0.0 }
 0x18d   :  { %v1343_v60 = vmax.f32 %v1041_v57, 0.0  ;;  %v2346_v39 = vpop.f32.mrb[86].mxu0  ;;  %2495 = vmatprep.subr.bf16.mxu1 %v2494_v55 }
 0x18e   :  { %v1056_v62 = vadd.f32 %v2346_v39, %v3159_v9  ;;  %v1050_v63 = vpop.f32.mrb[87].mxu0  ;;  %2497 = vmatpush3.bf16.msra.mxu1 %v3368_v30 }
 0x18f   :  { %v2498_v0 = vpack.c.bf16 %v1344_v59, %v1343_v60  ;;  %v1051_v2 = vadd.f32 %v3159_v9, %v1050_v63 }
 0x190   :  { %v1346_v3 = vmax.f32 %v1056_v62, 0.0 }
 0x191   :  { %v1345_v40 = vmax.f32 %v1051_v2, 0.0  ;;  %v2349_v6 = vpop.f32.mrb[88].mxu0  ;;  %2499 = vmatprep.subr.bf16.mxu1 %v2498_v0 }
 0x192   :  { %v1066_v20 = vadd.f32 %v2349_v6, %v3159_v9  ;;  %v1060_v8 = vpop.f32.mrb[89].mxu0  ;;  %2501 = vmatpush3.bf16.msra.mxu1 %v3372_v42 }
 0x193   :  { %v2502_v7 = vpack.c.bf16 %v1346_v3, %v1345_v40  ;;  %v1061_v14 = vadd.f32 %v3159_v9, %v1060_v8 }
 0x194   :  { %v1348_v15 = vmax.f32 %v1066_v20, 0.0 }
 0x195   :  { %v1347_v16 = vmax.f32 %v1061_v14, 0.0  ;;  %v2352_v32 = vpop.f32.mrb[90].mxu0  ;;  %2503 = vmatprep.subr.bf16.mxu1 %v2502_v7 }
 0x196   :  { %v1076_v30 = vadd.f32 %v2352_v32, %v3159_v9  ;;  %v1070_v21 = vpop.f32.mrb[91].mxu0  ;;  %2505 = vmatpush3.bf16.msra.mxu1 %v3376_v52  ;;  %v1390_v52 = vld [vmem:[%s3453_s1 + $0x18] sm:$0xff] }
 0x197   :  { %v2506_v26 = vpack.c.bf16 %v1348_v15, %v1347_v16  ;;  %v1071_v24 = vadd.f32 %v3159_v9, %v1070_v21  ;;  %v1398_v9 = vcombine.high %v1390_v52, %v1390_v52 }
 0x198   :  { %v1350_v50 = vmax.f32 %v1076_v30, 0.0 }
 0x199   :  { %v1349_v28 = vmax.f32 %v1071_v24, 0.0  ;;  %2507 = vmatprep.subr.bf16.mxu1 %v2506_v26 }
 0x19a   :  { %2509 = vmatpush3.bf16.msra.mxu1 %v3380_v25 }
 0x19b   :  { %v2510_v42 = vpack.c.bf16 %v1350_v50, %v1349_v28 }
 0x19d   :  { %2511 = vmatprep.subr.bf16.mxu1 %v2510_v42 }
 0x19e   :  { %2513 = vmatpush3.bf16.msra.mxu1 %v3384_v19 }
 0x19f   :  { %2515 = vmatprep.subr.bf16.mxu1 %v3190_v5 }
 0x1a2   :  { %2517 = vmatpush3.bf16.msra.mxu1 %v2516_v17 }
 0x1a3   :  { %2519 = vmatprep.subr.bf16.mxu1 %v3198_v22 }
 0x1a6   :  { %2521 = vmatpush3.bf16.msra.mxu1 %v2520_v58 }
 0x1a7   :  { %2523 = vmatprep.subr.bf16.mxu1 %v3266_v44  ;;  %v2577_v44 = vmov 0.0  }
 0x1a9   :  { %1608 = vmatmul.mubr.f32.vlgmr.msra.gmra.mrb[40].mxu1 %v3357_v11 }
 0x1aa   :  { %2525 = vmatpush3.bf16.msra.mxu1 %v3206_v38  ;;  %1677 = vmatprep.mubr.f32.mxu1 %v1398_v9 }
 0x1ab   :  { %2527 = vmatprep.subr.bf16.mxu1 %v3278_v61 }
 0x1ae   :  { %2529 = vmatpush3.bf16.msra.mxu1 %v3213_v54  ;;  %v2575_v54 = vmov 0.0|0.0  }
 0x1af   :  { %2531 = vmatprep.subr.bf16.mxu1 %v3286_v13 }
 0x1b2   :  { %2533 = vmatpush3.bf16.msra.mxu1 %v3220_v4  ;;  %v1683_v4 = vld [vmem:[%s3455_s4] sm:$0xff] }
 0x1b3   :  { %2535 = vmatprep.subr.bf16.mxu1 %v3294_v31 }
 0x1b6   :  { %2537 = vmatpush3.bf16.msra.mxu1 %v3227_v23  ;;  %v1684_v23 = vld [vmem:[%s3455_s4 + $0x8] sm:$0xff] }
 0x1b7   :  { %2539 = vmatprep.subr.bf16.mxu1 %v3301_v48 }
 0x1ba   :  { %2541 = vmatpush3.bf16.msra.mxu1 %v3234_v41  ;;  %v2555_v41 = vpack.c.bf16 %v1684_v23, %v1683_v4 }
 0x1bb   :  { %2543 = vmatprep.subr.bf16.mxu1 %v3311_v47 }
 0x1be   :  { %2545 = vmatpush3.bf16.msra.mxu1 %v3241_v56  ;;  %v1685_v56 = vld [vmem:[%s3455_s4 + $0x10] sm:$0xff] }
 0x1bf   :  { %2547 = vmatprep.subr.bf16.mxu1 %v3319_v29 }
 0x1c2   :  { %2549 = vmatpush3.bf16.msra.mxu1 %v3250_v12  ;;  %v1686_v12 = vld [vmem:[%s3455_s4 + $0x18] sm:$0xff] }
 0x1c3   :  { %2551 = vmatprep.subr.bf16.mxu1 %v3326_v46 }
 0x1c6   :  { %2553 = vmatpush3.bf16.msra.mxu1 %v3254_v27  ;;  %v2558_v27 = vpack.c.bf16 %v1686_v12, %v1685_v56 }
 0x1c7   :  { %2554 = vmatprep.subr.bf16.mxu1 %v2575_v54 }
 0x1c9   :  { %1678 = vmatmul.mubr.f32.vlgmr.msra.gmra.mrb[42].mxu1 %v1390_v52 }
 0x1ca   :  { %2556 = vmatpush3.bf16.msra.mxu1 %v2555_v41  ;;  %2415 = vmatprep.mubr.msk.f32.mxu1 %vm2576_vm2, %v2577_v44 }
 0x1cb   :  { %2557 = vmatprep.subr.bf16.mxu1 %v2575_v54 }
 0x1ce   :  { %2559 = vmatpush3.bf16.msra.mxu1 %v2558_v27 }
 0x1fc   :  { %v2092_v5 = vpop.f32.mrb[36].mxu1 }
 0x1fd   :  { %v2093_v22 = vpop.f32.mrb[37].mxu1 }
 0x1fe   :  { %v2094_v38 = vadd.f32 %v2093_v22, %v2092_v5 }
 0x23c   :  { %v2127_v61 = vpop.f32.mrb[38].mxu1 }
 0x23d   :  { %v2128_v13 = vpop.f32.mrb[39].mxu1 }
 0x23e   :  { %v2129_v31 = vadd.f32 %v2128_v13, %v2127_v61 }
 0x240   :  { %v1540_v48 = vadd.f32 %v2129_v31, %v2094_v38 }
 0x27c   :  { %v2162_v47 = vpop.f32.mrb[40].mxu1 }
 0x27d   :  { %v2163_v29 = vpop.f32.mrb[41].mxu1 }
 0x27e   :  { %v2164_v46 = vadd.f32 %v2163_v29, %v2162_v47 }
 0x280   :  { %v1610_v11 = vadd.f32 %v2164_v46, %v1540_v48 }
 0x29c   :  { %v2197_v25 = vpop.f32.mrb[42].mxu1 }
 0x29d   :  { %v2198_v19 = vpop.f32.mrb[43].mxu1 }
 0x29e   :  { %v2199_v17 = vadd.f32 %v2198_v19, %v2197_v25 }
 0x2a0   :  { %v1680_v58 = vadd.f32 %v2199_v17, %v1610_v11 }
 0x2a2   :  { %2416 = vmatmul.mubr.msk.f32.vlgmr.msra.gmra.mrb[44].mxu1 %vm1694_vm3, %v1680_v58 }
 0x375   :  { %v1764_v35 = vpop.f32.mrb[44].mxu1 }
 0x376   :  { %v1765_v36 = vadd.f32 %v1925_v49, %v1764_v35  ;;  %v2417_v37 = vpop.f32.mrb[45].mxu1 }
 0x378   :  { %v1768_v1 = vmul.f32 %v1765_v36, %v1765_v36 }
 0x37a   :  { %v1769_v33 = vsel %vm550_vm1, %v1768_v1, 0.0 }
 0x37b   :  { %1770 = vadd.xlane.f32.xlu0 %v1769_v33 }
 0x408   :  { %v1771_v43 = vpop.xlane.xlu0 %1770 }
 0x409   :  { %v1772_v10 = vmax.f32 %v1771_v43, 1e-24 }
 0x40b   :  { %2573 = vrsqrt.f32 %v1772_v10 }
 0x415   :  { %v2574_v34 = vpop.eup %2573 }
 0x416   :  { %v1774_v45 = vmul.f32 %v2574_v34, %v1765_v36 }
 0x418   :  { %v1777_v51 = vrot.slane %v1774_v45, 2  ;;  %1775 = vst [vmem:[%s3457_s6] sm:$0xf] %v1774_v45 }
 0x41a   :  { %v1779_v18 = vmul.f32 %v1777_v51, %v1774_v45 }
 0x41c   :  { %v1781_v53 = vsel %vm1780_vm4, %v1779_v18, 0.0 }
 0x41d   :  { %1782 = vadd.xlane.f32.xlu0 %v1781_v53 }
 0x4aa   :  { %v1783_v55 = vpop.xlane.xlu0 %1782 }
 0x4ab   :  { %v1784_v57 = vmul.f32 14.285714, %v1783_v55 }
 0x4ad   :  { %1786 = vst.msk [vmem:[%s3458_s7] sm:$0x3] %vm1785_vm5, %v1784_v57 }

</bundles_post_ra>
